<compile_context>
chip_gen: v7x
topology: tpu7x:2x2x1
jax: 0.10.0
libtpu: 0.0.40
codegen_flags: <defaults>
</compile_context>

<pallas_src>
import jax
import jax.numpy as jnp
import numpy as np
from jax.experimental import pallas as pl
from jax.experimental.pallas import tpu as pltpu

# Keep the pure-JAX reference at full f32 matmul precision so it is comparable with
# the kernel's f32 MXU matmuls.
jax.config.update("jax_default_matmul_precision", "highest")

_HIGHEST = jax.lax.Precision.HIGHEST


def make_cross_attention_kernel(use_bf16_matmul: bool = False):
    """Build the kernel body; `use_bf16_matmul` casts MXU operands to bf16 (f32 acc)."""
    cast = (lambda x: x.astype(jnp.bfloat16)) if use_bf16_matmul else (lambda x: x)

    def kernel(src_ref, tgt_ref, mask_ref,
               wq_ref, wkv_ref,
               w1_ref, b1_ref, w2_ref, b2_ref,
               gamma_ref, beta_ref,
               out_ref, attn_ref):
        bt, Ls, D = src_ref.shape
        _, Lt, _ = tgt_ref.shape

        # ---- shared-weight projections on the flattened batch tile -------------
        src2 = src_ref[...].reshape(bt * Ls, D)        # [bt*Ls, D]
        tgt2 = tgt_ref[...].reshape(bt * Lt, D)        # [bt*Lt, D]  (no pad rows)

        q2 = jnp.dot(cast(src2), cast(wq_ref[...]),
                     preferred_element_type=jnp.float32,
                     precision=_HIGHEST)                               # [bt*Ls, D]
        kv2 = jnp.dot(cast(tgt2), cast(wkv_ref[...]),
                      preferred_element_type=jnp.float32,
                      precision=_HIGHEST)                              # [bt*Lt, 2D]

        def l2norm(x):  # F.normalize(p=2, dim=-1, eps=1e-12)
            n = jnp.sqrt(jnp.sum(x * x, axis=-1, keepdims=True))
            return x / jnp.maximum(n, 1e-12)

        q = l2norm(q2).reshape(bt, Ls, D)
        k = l2norm(kv2[:, :D]).reshape(bt, Lt, D)
        v = l2norm(kv2[:, D:]).reshape(bt, Lt, D)

        # ---- scores + mask (where-select == masked_fill) + exact softmax -------
        # einsum contracts k along its stored feature axis -> no in-kernel transpose.
        score = jnp.einsum("bsd,btd->bst", cast(q), cast(k),
                           preferred_element_type=jnp.float32,
                           precision=_HIGHEST)                         # [bt, Ls, Lt]
        score = jnp.where(mask_ref[...] == 0.0, -1e9, score)           # mask: [bt,1,Lt]

        m = jnp.max(score, axis=-1, keepdims=True)
        e = jnp.exp(score - m)
        attn = e / jnp.sum(e, axis=-1, keepdims=True)
        attn_ref[...] = attn                                           # unpadded store

        # ---- attention-weighted values, feed-forward, residual + LayerNorm -----
        attn_f = jnp.einsum("bst,btd->bsd", cast(attn), cast(v),
                            preferred_element_type=jnp.float32,
                            precision=_HIGHEST)                        # [bt, Ls, D]
        af = attn_f.reshape(bt * Ls, D)

        h = jnp.dot(cast(af), cast(w1_ref[...]),
                    preferred_element_type=jnp.float32,
                    precision=_HIGHEST) + b1_ref[...]
        h = jnp.maximum(h, 0.0)
        f2 = jnp.dot(cast(h), cast(w2_ref[...]),
                     preferred_element_type=jnp.float32,
                     precision=_HIGHEST) + b2_ref[...]

        y = af + f2                                                    # residual (dp2 = id)
        mu = jnp.mean(y, axis=-1, keepdims=True)
        var = jnp.mean((y - mu) * (y - mu), axis=-1, keepdims=True)
        yhat = (y - mu) * jax.lax.rsqrt(var + 1e-5)
        out_ref[...] = (yhat * gamma_ref[...] + beta_ref[...]).reshape(bt, Ls, D)

    return kernel


def _device_kind() -> str:
    try:
        return jax.devices()[0].device_kind.lower()
    except Exception:
        return ""


def cross_attention(src, tgt, tgt_mask, params, *, b_tile=None, use_bf16_matmul=False):
    """src: [B, Ls, D]  tgt: [B, Lt, D]  tgt_mask: [B, Lt] (float/bool, 1=keep)."""
    B, Ls, D = src.shape
    _, Lt, Dt = tgt.shape
    assert Dt == D, "module's residual/FF requires src_dim == tgt_dim"
    F = params["w1_t"].shape[1]

    kind = _device_kind()
    is_v7 = "v7" in kind

    if b_tile is None:
        # v5e/v6e: the grid is a sequential loop on one TensorCore -> one grid step.
        # v7x: two TensorCores -> keep 2 "parallel" steps when B allows.
        b_tile = B // 2 if (is_v7 and B >= 2 and B % 2 == 0) else B
    assert B % b_tile == 0, "b_tile must divide B"
    n_steps = B // b_tile

    # Mask as a [B, 1, Lt] float operand (broadcast over the src axis in-kernel).
    mask3 = tgt_mask.astype(jnp.float32).reshape(B, 1, Lt)

    # Fuse K/V projection weights into one wide operand.
    wkv_t = jnp.concatenate([params["wk_t"], params["wv_t"]], axis=1)   # [D, 2D]

    def full(shape):
        # Constant index_map -> Pallas fetches this operand only on the first step.
        return pl.BlockSpec(shape, lambda b: (0,) * len(shape))

    grid_spec = pltpu.PrefetchScalarGridSpec(
        num_scalar_prefetch=0,
        grid=(n_steps,),
        in_specs=[
            pl.BlockSpec((b_tile, Ls, D), lambda b: (b, 0, 0)),        # src
            pl.BlockSpec((b_tile, Lt, D), lambda b: (b, 0, 0)),        # tgt (unpadded)
            pl.BlockSpec((b_tile, 1, Lt), lambda b: (b, 0, 0)),        # mask
            full((D, D)),        # Wq^T
            full((D, 2 * D)),    # [Wk^T | Wv^T]
            full((D, F)),        # W1^T
            full((1, F)),        # b1
            full((F, D)),        # W2^T
            full((1, D)),        # b2
            full((1, D)),        # LayerNorm gamma
            full((1, D)),        # LayerNorm beta
        ],
        out_specs=[
            pl.BlockSpec((b_tile, Ls, D), lambda b: (b, 0, 0)),        # normed attn_f
            pl.BlockSpec((b_tile, Ls, Lt), lambda b: (b, 0, 0)),       # attn (unpadded)
        ],
    )

    # Per-generation VMEM budget: leave headroom under v7x's 64 MiB; v5e/v6e have
    # 128 MiB physical but only 16/32 MiB scoped by default, so set explicitly.
    vmem_limit = (48 if is_v7 else 64) * 1024 * 1024

    out, attn = pl.pallas_call(
        make_cross_attention_kernel(use_bf16_matmul),
        out_shape=(
            jax.ShapeDtypeStruct((B, Ls, D), jnp.float32),
            jax.ShapeDtypeStruct((B, Ls, Lt), jnp.float32),
        ),
        grid_spec=grid_spec,
        compiler_params=pltpu.CompilerParams(
            dimension_semantics=("parallel",),
            vmem_limit_bytes=vmem_limit,
        ),
    )(src, tgt, mask3,
      params["wq_t"], wkv_t,
      params["w1_t"], params["b1"], params["w2_t"], params["b2"],
      params["gamma"], params["beta"])

    return out, attn


def reference(src, tgt, tgt_mask, params):
    """Pure-JAX reference mirroring the PyTorch forward (eval mode)."""
    def l2n(x):
        n = jnp.sqrt(jnp.sum(x * x, axis=-1, keepdims=True))
        return x / jnp.maximum(n, 1e-12)

    q = l2n(jnp.dot(src, params["wq_t"], precision=_HIGHEST))
    k = l2n(jnp.dot(tgt, params["wk_t"], precision=_HIGHEST))
    v = l2n(jnp.dot(tgt, params["wv_t"], precision=_HIGHEST))
    score = jnp.einsum("bsd,btd->bst", q, k, precision=_HIGHEST)
    score = jnp.where(tgt_mask[:, None, :] == 0.0, -1e9, score)
    m = jnp.max(score, axis=-1, keepdims=True)
    e = jnp.exp(score - m)
    attn = e / jnp.sum(e, axis=-1, keepdims=True)
    attn_f = jnp.einsum("bst,btd->bsd", attn, v, precision=_HIGHEST)
    h = jnp.maximum(jnp.dot(attn_f, params["w1_t"], precision=_HIGHEST) + params["b1"], 0.0)
    f2 = jnp.dot(h, params["w2_t"], precision=_HIGHEST) + params["b2"]
    y = attn_f + f2
    mu = jnp.mean(y, axis=-1, keepdims=True)
    var = jnp.mean((y - mu) ** 2, axis=-1, keepdims=True)
    yhat = (y - mu) * jax.lax.rsqrt(var + 1e-5)
    return yhat * params["gamma"] + params["beta"], attn


if __name__ == "__main__":
    B, Ls, Lt, D = 2, 8, 16, 32      # src_dim = tgt_dim = D
    FF = 2 * D                        # feedforward_dim

    key = jax.random.PRNGKey(0)
    ks = jax.random.split(key, 10)

    src = jax.random.normal(ks[0], (B, Ls, D), jnp.float32)
    tgt = jax.random.normal(ks[1], (B, Lt, D), jnp.float32)
    # mask: first few tgt positions valid, rest masked (varies per batch)
    lens = jnp.array([Lt, Lt // 2])
    tgt_mask = (jnp.arange(Lt)[None, :] < lens[:, None]).astype(jnp.float32)

    def lin(k, fan_in, shape):
        bound = 1.0 / np.sqrt(fan_in)
        return jax.random.uniform(k, shape, jnp.float32, -bound, bound)

    params = dict(
        wq_t=lin(ks[2], D, (D, D)),
        wk_t=lin(ks[3], D, (D, D)),
        wv_t=lin(ks[4], D, (D, D)),
        w1_t=lin(ks[5], D, (D, FF)),
        b1=lin(ks[6], D, (1, FF)),
        w2_t=lin(ks[7], FF, (FF, D)),
        b2=lin(ks[8], FF, (1, D)),
        gamma=jnp.ones((1, D), jnp.float32),
        beta=jnp.zeros((1, D), jnp.float32),
    )

    out, attn = cross_attention(src, tgt, tgt_mask, params)
    jax.block_until_ready((out, attn))

    ref_out, ref_attn = reference(src, tgt, tgt_mask, params)
    np.testing.assert_allclose(np.asarray(attn), np.asarray(ref_attn), atol=1e-3, rtol=1e-3)
    np.testing.assert_allclose(np.asarray(out), np.asarray(ref_out), atol=2e-3, rtol=2e-3)

    print("KERNEL_OK")
</pallas_src>

<mosaic_0001>
module attributes {stable_mosaic.version = 11 : i64} {
  func.func @kernel(%arg0: i32, %arg1: memref<2x8x32xf32, #tpu.memory_space<vmem>>, %arg2: memref<2x16x32xf32, #tpu.memory_space<vmem>>, %arg3: memref<2x1x16xf32, #tpu.memory_space<vmem>>, %arg4: memref<32x32xf32, #tpu.memory_space<vmem>>, %arg5: memref<32x64xf32, #tpu.memory_space<vmem>>, %arg6: memref<32x64xf32, #tpu.memory_space<vmem>>, %arg7: memref<1x64xf32, #tpu.memory_space<vmem>>, %arg8: memref<64x32xf32, #tpu.memory_space<vmem>>, %arg9: memref<1x32xf32, #tpu.memory_space<vmem>>, %arg10: memref<1x32xf32, #tpu.memory_space<vmem>>, %arg11: memref<1x32xf32, #tpu.memory_space<vmem>>, %arg12: memref<2x8x32xf32, #tpu.memory_space<vmem>>, %arg13: memref<2x8x16xf32, #tpu.memory_space<vmem>>) attributes {dimension_semantics = [#tpu.dimension_semantics<parallel>], iteration_bounds = array<i64: 1>, scalar_prefetch = 0 : i64, scratch_operands = 0 : i64, tpu.core_type = #tpu.core_type<tc>, window_params = [{transform_indices = @transform_0, window_bounds = array<i64: 2, 8, 32>}, {transform_indices = @transform_1, window_bounds = array<i64: 2, 16, 32>}, {transform_indices = @transform_2, window_bounds = array<i64: 2, 1, 16>}, {pipeline_mode = #tpu.pipeline_mode<synchronous>, transform_indices = @transform_3, window_bounds = array<i64: 32, 32>}, {pipeline_mode = #tpu.pipeline_mode<synchronous>, transform_indices = @transform_4, window_bounds = array<i64: 32, 64>}, {pipeline_mode = #tpu.pipeline_mode<synchronous>, transform_indices = @transform_5, window_bounds = array<i64: 32, 64>}, {pipeline_mode = #tpu.pipeline_mode<synchronous>, transform_indices = @transform_6, window_bounds = array<i64: 1, 64>}, {pipeline_mode = #tpu.pipeline_mode<synchronous>, transform_indices = @transform_7, window_bounds = array<i64: 64, 32>}, {pipeline_mode = #tpu.pipeline_mode<synchronous>, transform_indices = @transform_8, window_bounds = array<i64: 1, 32>}, {pipeline_mode = #tpu.pipeline_mode<synchronous>, transform_indices = @transform_9, window_bounds = array<i64: 1, 32>}, {pipeline_mode = #tpu.pipeline_mode<synchronous>, transform_indices = @transform_10, window_bounds = array<i64: 1, 32>}, {transform_indices = @transform_11, window_bounds = array<i64: 2, 8, 32>}, {transform_indices = @transform_12, window_bounds = array<i64: 2, 8, 16>}]} {
    %c0 = arith.constant 0 : index
    %c0_0 = arith.constant 0 : index
    %c0_1 = arith.constant 0 : index
    %0 = vector.load %arg1[%c0, %c0_0, %c0_1] : memref<2x8x32xf32, #tpu.memory_space<vmem>>, vector<2x8x32xf32>
    %1 = vector.shape_cast %0 : vector<2x8x32xf32> to vector<16x32xf32>
    %c0_2 = arith.constant 0 : index
    %c0_3 = arith.constant 0 : index
    %c0_4 = arith.constant 0 : index
    %2 = vector.load %arg2[%c0_2, %c0_3, %c0_4] : memref<2x16x32xf32, #tpu.memory_space<vmem>>, vector<2x16x32xf32>
    %3 = vector.shape_cast %2 : vector<2x16x32xf32> to vector<32x32xf32>
    %c0_5 = arith.constant 0 : index
    %c0_6 = arith.constant 0 : index
    %4 = vector.load %arg4[%c0_5, %c0_6] : memref<32x32xf32, #tpu.memory_space<vmem>>, vector<32x32xf32>
    %cst = arith.constant dense<0.000000e+00> : vector<16x32xf32>
    %5 = tpu.matmul %1, %4, %cst {dimension_numbers = #tpu.dot_dimension_numbers<[1], [0], [0], [1], [0, 0, 1, 1], [], []>, precision = #tpu.contract_precision<fp32>} : vector<16x32xf32>, vector<32x32xf32>, vector<16x32xf32> -> vector<16x32xf32>
    %c0_7 = arith.constant 0 : index
    %c0_8 = arith.constant 0 : index
    %6 = vector.load %arg5[%c0_7, %c0_8] : memref<32x64xf32, #tpu.memory_space<vmem>>, vector<32x64xf32>
    %cst_9 = arith.constant dense<0.000000e+00> : vector<32x64xf32>
    %7 = tpu.matmul %3, %6, %cst_9 {dimension_numbers = #tpu.dot_dimension_numbers<[1], [0], [0], [1], [0, 0, 1, 1], [], []>, precision = #tpu.contract_precision<fp32>} : vector<32x32xf32>, vector<32x64xf32>, vector<32x64xf32> -> vector<32x64xf32>
    %8 = arith.mulf %5, %5 : vector<16x32xf32>
    %cst_10 = arith.constant dense<0.000000e+00> : vector<16xf32>
    %9 = vector.multi_reduction <add>, %8, %cst_10 [1] : vector<16x32xf32> to vector<16xf32>
    %10 = vector.shape_cast %9 : vector<16xf32> to vector<16x1xf32>
    %11 = math.sqrt %10 : vector<16x1xf32>
    %cst_11 = arith.constant 9.99999996E-13 : f32
    %12 = vector.broadcast %cst_11 : f32 to vector<16x1xf32>
    %13 = arith.maximumf %11, %12 : vector<16x1xf32>
    %14 = vector.broadcast %13 : vector<16x1xf32> to vector<16x32xf32>
    %15 = arith.divf %5, %14 : vector<16x32xf32>
    %16 = vector.shape_cast %15 : vector<16x32xf32> to vector<2x8x32xf32>
    %17 = vector.extract_strided_slice %7 {offsets = [0, 0], sizes = [32, 32], strides = [1, 1]} : vector<32x64xf32> to vector<32x32xf32>
    %18 = arith.mulf %17, %17 : vector<32x32xf32>
    %cst_12 = arith.constant dense<0.000000e+00> : vector<32xf32>
    %19 = vector.multi_reduction <add>, %18, %cst_12 [1] : vector<32x32xf32> to vector<32xf32>
    %20 = vector.shape_cast %19 : vector<32xf32> to vector<32x1xf32>
    %21 = math.sqrt %20 : vector<32x1xf32>
    %cst_13 = arith.constant 9.99999996E-13 : f32
    %22 = vector.broadcast %cst_13 : f32 to vector<32x1xf32>
    %23 = arith.maximumf %21, %22 : vector<32x1xf32>
    %24 = vector.broadcast %23 : vector<32x1xf32> to vector<32x32xf32>
    %25 = arith.divf %17, %24 : vector<32x32xf32>
    %26 = vector.shape_cast %25 : vector<32x32xf32> to vector<2x16x32xf32>
    %27 = vector.extract_strided_slice %7 {offsets = [0, 32], sizes = [32, 32], strides = [1, 1]} : vector<32x64xf32> to vector<32x32xf32>
    %28 = arith.mulf %27, %27 : vector<32x32xf32>
    %cst_14 = arith.constant dense<0.000000e+00> : vector<32xf32>
    %29 = vector.multi_reduction <add>, %28, %cst_14 [1] : vector<32x32xf32> to vector<32xf32>
    %30 = vector.shape_cast %29 : vector<32xf32> to vector<32x1xf32>
    %31 = math.sqrt %30 : vector<32x1xf32>
    %cst_15 = arith.constant 9.99999996E-13 : f32
    %32 = vector.broadcast %cst_15 : f32 to vector<32x1xf32>
    %33 = arith.maximumf %31, %32 : vector<32x1xf32>
    %34 = vector.broadcast %33 : vector<32x1xf32> to vector<32x32xf32>
    %35 = arith.divf %27, %34 : vector<32x32xf32>
    %36 = vector.shape_cast %35 : vector<32x32xf32> to vector<2x16x32xf32>
    "tpu.trace_start"() <{level = 10 : i32, message = "bsd,btd->bst"}> : () -> ()
    %cst_16 = arith.constant dense<0.000000e+00> : vector<2x8x16xf32>
    %37 = tpu.matmul %16, %26, %cst_16 {dimension_numbers = #tpu.dot_dimension_numbers<[2], [2], [1], [1], [0, 0, 0, 1, 1, 1], [0], [0]>, precision = #tpu.contract_precision<fp32>} : vector<2x8x32xf32>, vector<2x16x32xf32>, vector<2x8x16xf32> -> vector<2x8x16xf32>
    "tpu.trace_stop"() : () -> ()
    %c0_17 = arith.constant 0 : index
    %c0_18 = arith.constant 0 : index
    %c0_19 = arith.constant 0 : index
    %38 = vector.load %arg3[%c0_17, %c0_18, %c0_19] : memref<2x1x16xf32, #tpu.memory_space<vmem>>, vector<2x1x16xf32>
    %cst_20 = arith.constant 0.000000e+00 : f32
    %39 = vector.broadcast %cst_20 : f32 to vector<2x1x16xf32>
    %40 = arith.cmpf oeq, %38, %39 : vector<2x1x16xf32>
    %cst_21 = arith.constant -1.000000e+09 : f32
    %41 = vector.shape_cast %40 : vector<2x1x16xi1> to vector<2x1x16xi1>
    %42 = vector.broadcast %41 : vector<2x1x16xi1> to vector<2x8x16xi1>
    %43 = vector.broadcast %cst_21 : f32 to vector<2x8x16xf32>
    %44 = arith.select %42, %43, %37 : vector<2x8x16xi1>, vector<2x8x16xf32>
    %cst_22 = arith.constant dense<0xFF800000> : vector<2x8xf32>
    %45 = vector.multi_reduction <maximumf>, %44, %cst_22 [2] : vector<2x8x16xf32> to vector<2x8xf32>
    %46 = vector.shape_cast %45 : vector<2x8xf32> to vector<2x8x1xf32>
    %47 = vector.broadcast %46 : vector<2x8x1xf32> to vector<2x8x16xf32>
    %48 = arith.subf %44, %47 : vector<2x8x16xf32>
    %49 = math.exp %48 : vector<2x8x16xf32>
    %cst_23 = arith.constant dense<0.000000e+00> : vector<2x8xf32>
    %50 = vector.multi_reduction <add>, %49, %cst_23 [2] : vector<2x8x16xf32> to vector<2x8xf32>
    %51 = vector.shape_cast %50 : vector<2x8xf32> to vector<2x8x1xf32>
    %52 = vector.broadcast %51 : vector<2x8x1xf32> to vector<2x8x16xf32>
    %53 = arith.divf %49, %52 : vector<2x8x16xf32>
    %c0_24 = arith.constant 0 : index
    %c0_25 = arith.constant 0 : index
    %c0_26 = arith.constant 0 : index
    %54 = vector.load %arg13[%c0_24, %c0_25, %c0_26] : memref<2x8x16xf32, #tpu.memory_space<vmem>>, vector<2x8x16xf32>
    tpu.vector_store %arg13[%c0_24, %c0_25, %c0_26], %53 {strides = array<i32>} : memref<2x8x16xf32, #tpu.memory_space<vmem>>, vector<2x8x16xf32>,
    "tpu.trace_start"() <{level = 10 : i32, message = "bst,btd->bsd"}> : () -> ()
    %cst_27 = arith.constant dense<0.000000e+00> : vector<2x8x32xf32>
    %55 = tpu.matmul %53, %36, %cst_27 {dimension_numbers = #tpu.dot_dimension_numbers<[2], [1], [1], [2], [0, 0, 0, 1, 1, 2], [0], [0]>, precision = #tpu.contract_precision<fp32>} : vector<2x8x16xf32>, vector<2x16x32xf32>, vector<2x8x32xf32> -> vector<2x8x32xf32>
    "tpu.trace_stop"() : () -> ()
    %56 = vector.shape_cast %55 : vector<2x8x32xf32> to vector<16x32xf32>
    %c0_28 = arith.constant 0 : index
    %c0_29 = arith.constant 0 : index
    %57 = vector.load %arg6[%c0_28, %c0_29] : memref<32x64xf32, #tpu.memory_space<vmem>>, vector<32x64xf32>
    %cst_30 = arith.constant dense<0.000000e+00> : vector<16x64xf32>
    %58 = tpu.matmul %56, %57, %cst_30 {dimension_numbers = #tpu.dot_dimension_numbers<[1], [0], [0], [1], [0, 0, 1, 1], [], []>, precision = #tpu.contract_precision<fp32>} : vector<16x32xf32>, vector<32x64xf32>, vector<16x64xf32> -> vector<16x64xf32>
    %c0_31 = arith.constant 0 : index
    %c0_32 = arith.constant 0 : index
    %59 = vector.load %arg7[%c0_31, %c0_32] : memref<1x64xf32, #tpu.memory_space<vmem>>, vector<1x64xf32>
    %60 = vector.broadcast %59 : vector<1x64xf32> to vector<16x64xf32>
    %61 = arith.addf %58, %60 : vector<16x64xf32>
    %cst_33 = arith.constant 0.000000e+00 : f32
    %62 = vector.broadcast %cst_33 : f32 to vector<16x64xf32>
    %63 = arith.maximumf %61, %62 : vector<16x64xf32>
    %c0_34 = arith.constant 0 : index
    %c0_35 = arith.constant 0 : index
    %64 = vector.load %arg8[%c0_34, %c0_35] : memref<64x32xf32, #tpu.memory_space<vmem>>, vector<64x32xf32>
    %cst_36 = arith.constant dense<0.000000e+00> : vector<16x32xf32>
    %65 = tpu.matmul %63, %64, %cst_36 {dimension_numbers = #tpu.dot_dimension_numbers<[1], [0], [0], [1], [0, 0, 1, 1], [], []>, precision = #tpu.contract_precision<fp32>} : vector<16x64xf32>, vector<64x32xf32>, vector<16x32xf32> -> vector<16x32xf32>
    %c0_37 = arith.constant 0 : index
    %c0_38 = arith.constant 0 : index
    %66 = vector.load %arg9[%c0_37, %c0_38] : memref<1x32xf32, #tpu.memory_space<vmem>>, vector<1x32xf32>
    %67 = vector.broadcast %66 : vector<1x32xf32> to vector<16x32xf32>
    %68 = arith.addf %65, %67 : vector<16x32xf32>
    %69 = arith.addf %56, %68 : vector<16x32xf32>
    %cst_39 = arith.constant dense<0.000000e+00> : vector<16xf32>
    %70 = vector.multi_reduction <add>, %69, %cst_39 [1] : vector<16x32xf32> to vector<16xf32>
    %71 = vector.shape_cast %70 : vector<16xf32> to vector<16x1xf32>
    %cst_40 = arith.constant 3.200000e+01 : f32
    %72 = vector.broadcast %cst_40 : f32 to vector<16x1xf32>
    %73 = arith.divf %71, %72 : vector<16x1xf32>
    %74 = vector.broadcast %73 : vector<16x1xf32> to vector<16x32xf32>
    %75 = arith.subf %69, %74 : vector<16x32xf32>
    %76 = vector.broadcast %73 : vector<16x1xf32> to vector<16x32xf32>
    %77 = arith.subf %69, %76 : vector<16x32xf32>
    %78 = arith.mulf %75, %77 : vector<16x32xf32>
    %cst_41 = arith.constant dense<0.000000e+00> : vector<16xf32>
    %79 = vector.multi_reduction <add>, %78, %cst_41 [1] : vector<16x32xf32> to vector<16xf32>
    %80 = vector.shape_cast %79 : vector<16xf32> to vector<16x1xf32>
    %cst_42 = arith.constant 3.200000e+01 : f32
    %81 = vector.broadcast %cst_42 : f32 to vector<16x1xf32>
    %82 = arith.divf %80, %81 : vector<16x1xf32>
    %83 = vector.broadcast %73 : vector<16x1xf32> to vector<16x32xf32>
    %84 = arith.subf %69, %83 : vector<16x32xf32>
    %cst_43 = arith.constant 9.99999974E-6 : f32
    %85 = vector.broadcast %cst_43 : f32 to vector<16x1xf32>
    %86 = arith.addf %82, %85 : vector<16x1xf32>
    %87 = math.rsqrt %86 : vector<16x1xf32>
    %88 = vector.broadcast %87 : vector<16x1xf32> to vector<16x32xf32>
    %89 = arith.mulf %84, %88 : vector<16x32xf32>
    %c0_44 = arith.constant 0 : index
    %c0_45 = arith.constant 0 : index
    %90 = vector.load %arg10[%c0_44, %c0_45] : memref<1x32xf32, #tpu.memory_space<vmem>>, vector<1x32xf32>
    %91 = vector.broadcast %90 : vector<1x32xf32> to vector<16x32xf32>
    %92 = arith.mulf %89, %91 : vector<16x32xf32>
    %c0_46 = arith.constant 0 : index
    %c0_47 = arith.constant 0 : index
    %93 = vector.load %arg11[%c0_46, %c0_47] : memref<1x32xf32, #tpu.memory_space<vmem>>, vector<1x32xf32>
    %94 = vector.broadcast %93 : vector<1x32xf32> to vector<16x32xf32>
    %95 = arith.addf %92, %94 : vector<16x32xf32>
    %96 = vector.shape_cast %95 : vector<16x32xf32> to vector<2x8x32xf32>
    %c0_48 = arith.constant 0 : index
    %c0_49 = arith.constant 0 : index
    %c0_50 = arith.constant 0 : index
    %97 = vector.load %arg12[%c0_48, %c0_49, %c0_50] : memref<2x8x32xf32, #tpu.memory_space<vmem>>, vector<2x8x32xf32>
    tpu.vector_store %arg12[%c0_48, %c0_49, %c0_50], %96 {strides = array<i32>} : memref<2x8x32xf32, #tpu.memory_space<vmem>>, vector<2x8x32xf32>,
    return
  }
  func.func @transform_0(%arg0: i32) -> (i32, i32, i32) {
    %c0_i32 = arith.constant 0 : i32
    %c0_i32_0 = arith.constant 0 : i32
    %c0_i32_1 = arith.constant 0 : i32
    return %arg0, %c0_i32, %c0_i32_0 : i32, i32, i32
  }
  func.func @transform_1(%arg0: i32) -> (i32, i32, i32) {
    %c0_i32 = arith.constant 0 : i32
    %c0_i32_0 = arith.constant 0 : i32
    %c0_i32_1 = arith.constant 0 : i32
    return %arg0, %c0_i32, %c0_i32_0 : i32, i32, i32
  }
  func.func @transform_2(%arg0: i32) -> (i32, i32, i32) {
    %c0_i32 = arith.constant 0 : i32
    %c0_i32_0 = arith.constant 0 : i32
    %c0_i32_1 = arith.constant 0 : i32
    return %arg0, %c0_i32, %c0_i32_0 : i32, i32, i32
  }
  func.func @transform_3(%arg0: i32) -> (i32, i32) {
    %c0_i32 = arith.constant 0 : i32
    %c0_i32_0 = arith.constant 0 : i32
    %c0_i32_1 = arith.constant 0 : i32
    return %c0_i32, %c0_i32_0 : i32, i32
  }
  func.func @transform_4(%arg0: i32) -> (i32, i32) {
    %c0_i32 = arith.constant 0 : i32
    %c0_i32_0 = arith.constant 0 : i32
    %c0_i32_1 = arith.constant 0 : i32
    return %c0_i32, %c0_i32_0 : i32, i32
  }
  func.func @transform_5(%arg0: i32) -> (i32, i32) {
    %c0_i32 = arith.constant 0 : i32
    %c0_i32_0 = arith.constant 0 : i32
    %c0_i32_1 = arith.constant 0 : i32
    return %c0_i32, %c0_i32_0 : i32, i32
  }
  func.func @transform_6(%arg0: i32) -> (i32, i32) {
    %c0_i32 = arith.constant 0 : i32
    %c0_i32_0 = arith.constant 0 : i32
    %c0_i32_1 = arith.constant 0 : i32
    return %c0_i32, %c0_i32_0 : i32, i32
  }
  func.func @transform_7(%arg0: i32) -> (i32, i32) {
    %c0_i32 = arith.constant 0 : i32
    %c0_i32_0 = arith.constant 0 : i32
    %c0_i32_1 = arith.constant 0 : i32
    return %c0_i32, %c0_i32_0 : i32, i32
  }
  func.func @transform_8(%arg0: i32) -> (i32, i32) {
    %c0_i32 = arith.constant 0 : i32
    %c0_i32_0 = arith.constant 0 : i32
    %c0_i32_1 = arith.constant 0 : i32
    return %c0_i32, %c0_i32_0 : i32, i32
  }
  func.func @transform_9(%arg0: i32) -> (i32, i32) {
    %c0_i32 = arith.constant 0 : i32
    %c0_i32_0 = arith.constant 0 : i32
    %c0_i32_1 = arith.constant 0 : i32
    return %c0_i32, %c0_i32_0 : i32, i32
  }
  func.func @transform_10(%arg0: i32) -> (i32, i32) {
    %c0_i32 = arith.constant 0 : i32
    %c0_i32_0 = arith.constant 0 : i32
    %c0_i32_1 = arith.constant 0 : i32
    return %c0_i32, %c0_i32_0 : i32, i32
  }
  func.func @transform_11(%arg0: i32) -> (i32, i32, i32) {
    %c0_i32 = arith.constant 0 : i32
    %c0_i32_0 = arith.constant 0 : i32
    %c0_i32_1 = arith.constant 0 : i32
    return %arg0, %c0_i32, %c0_i32_0 : i32, i32, i32
  }
  func.func @transform_12(%arg0: i32) -> (i32, i32, i32) {
    %c0_i32 = arith.constant 0 : i32
    %c0_i32_0 = arith.constant 0 : i32
    %c0_i32_1 = arith.constant 0 : i32
    return %arg0, %c0_i32, %c0_i32_0 : i32, i32, i32
  }
}

</mosaic_0001>

<bundles_post_ra>
// kernel: tpu_custom_call.1
= control target key start
LH: loop header
LB: loop body
LE: loop exit
PB: predicated region body
PF: predicated region fallthrough
CT: control target
= control target key end

     0   :  { %18 = vsyncpa [#allocation3], 0  ;;  %s6963_s0 = inlined_call_operand.hbm [shape: f32[2,8,32], index: 0, kind: input, shape index: {}]   ;;  %s6964_s1 = inlined_call_operand.hbm [shape: f32[2,16,32], index: 1, kind: input, shape index: {}]   ;;  %s6965_s2 = inlined_call_operand.hbm [shape: f32[2,1,16], index: 2, kind: input, shape index: {}]   ;;  %s6966_s3 = inlined_call_operand.hbm [shape: f32[32,32], index: 3, kind: input, shape index: {}]   ;;  %s6967_s4 = inlined_call_operand.hbm [shape: f32[32,64], index: 4, kind: input, shape index: {}]   ;;  %s6968_s5 = inlined_call_operand.hbm [shape: f32[32,64], index: 5, kind: input, shape index: {}]   ;;  %s6969_s6 = inlined_call_operand.hbm [shape: f32[1,64], index: 6, kind: input, shape index: {}]   ;;  %s6970_s7 = inlined_call_operand.hbm [shape: f32[64,32], index: 7, kind: input, shape index: {}]   ;;  %s6971_s8 = inlined_call_operand.hbm [shape: f32[1,32], index: 8, kind: input, shape index: {}]   ;;  %s6972_s9 = inlined_call_operand.hbm [shape: f32[1,32], index: 9, kind: input, shape index: {}]   ;;  %s6973_s10 = inlined_call_operand.hbm [shape: f32[1,32], index: 10, kind: input, shape index: {}]   ;;  %s6974_s11 = inlined_call_operand.hbm [shape: f32[2,8,32], index: 11, kind: output, shape index: {0}]   ;;  %s6975_s12 = inlined_call_operand.hbm [shape: f32[2,8,16], index: 12, kind: output, shape index: {1}]  }
   0x1   :  { %19 = vsyncpa [#allocation6], 0 }
   0x2   :  { %20 = vsyncpa [#allocation9], 0 }
   0x3   :  { %21 = vsyncpa [#allocation12], 0 }
   0x4   :  { %22 = vsyncpa [#allocation15], 0 }
   0x5   :  { %23 = vsyncpa [#allocation18], 0 }
   0x6   :  { %24 = vsyncpa [#allocation4], 0 }
   0x7   :  { %25 = vsyncpa [#allocation22], 0  ;;  %s6201_s21 = smov [#allocation5]   ;;  %s6202_s23 = smov [#allocation8]  }
   0x8   :  { %s43_s22 = sshll.u32 %s6201_s21, 4  ;;  %s67_s24 = sshll.u32 %s6202_s23, 4  ;;  %s44_s22 = int_to_ptr.vmem [resolvable:$true] %s43_s22  ;;  %s6288_s24 = int_to_ptr.vmem [resolvable:$true] %s67_s24 }
   0x9   :  { %s5899_s27 = scalar_lea.hbm %s6964_s1, 512 }
   0xa   :  { %p5900_p0 = scmp.ne.s32.totalorder %s6964_s1, %s5899_s27  ;;  %p5903_p1 = scmp.lt.u32.totalorder %s5899_s27, %s6964_s1 }
   0xc   :  { %p5905_p2 = pnand %p5903_p1, %p5900_p0 }
   0xe   :  { %5908 = shalt.err (!%p5905_p2)
}
   0xf   :  { %s5909_s14 = scalar_lea.vmem %s44_s22, 512  ;;  %p5914_p4 = scmp.lt.s32.totalorder %s44_s22, %s44_s22 }
  0x10   :  { %p5910_p3 = scmp.ne.s32.totalorder %s44_s22, %s5909_s14  ;;  %p5915_p5 = scmp.lt.s32.totalorder %s5909_s14, %s5909_s14 }
  0x12   :  { %p5916_p6 = por %p5915_p5, %p5914_p4 }
  0x14   :  { %p5917_p7 = pnand %p5916_p6, %p5910_p3 }
  0x16   :  { %5920 = shalt.err (!%p5917_p7)
}
  0x17   :  { %s6203_s15 = smov 128   ;;  %s6204_s16 = smov 8  }
  0x18   :  { %49 = dma.hbm_to_vmem [thread:$0]  %s6964_s1, 512, %s44_s22, [#allocation6], %s6203_s15, %s6203_s15, %s6204_s16  }
  0x19   :  { %s5921_s21 = scalar_lea.hbm %s6966_s3, 512 }
  0x1a   :  { %p5922_p8 = scmp.ne.s32.totalorder %s6966_s3, %s5921_s21  ;;  %p5925_p9 = scmp.lt.u32.totalorder %s5921_s21, %s6966_s3 }
  0x1c   :  { %p5927_p10 = pnand %p5925_p9, %p5922_p8 }
  0x1e   :  { %5930 = shalt.err (!%p5927_p10)
}
  0x1f   :  { %s5931_s28 = scalar_lea.vmem %s6288_s24, 512  ;;  %p5936_p12 = scmp.lt.s32.totalorder %s6288_s24, %s6288_s24 }
  0x20   :  { %p5932_p11 = scmp.ne.s32.totalorder %s6288_s24, %s5931_s28  ;;  %p5937_p13 = scmp.lt.s32.totalorder %s5931_s28, %s5931_s28 }
  0x22   :  { %p5938_p0 = por %p5937_p13, %p5936_p12 }
  0x24   :  { %p5939_p1 = pnand %p5938_p0, %p5932_p11 }
  0x26   :  { %5942 = shalt.err (!%p5939_p1)
}
  0x27   :  { %73 = dma.hbm_to_vmem [thread:$0]  %s6966_s3, 512, %s6288_s24, [#allocation9], %s6203_s15, %s6203_s15, %s6204_s16  }
  0x28   :  { %s6205_s29 = smov [#allocation11]   ;;  %s6206_s13 = smov [#allocation14]  }
  0x29   :  { %s91_s30 = sshll.u32 %s6205_s29, 4  ;;  %s113_s14 = sshll.u32 %s6206_s13, 4  ;;  %s92_s30 = int_to_ptr.vmem [resolvable:$true] %s91_s30  ;;  %s6325_s14 = int_to_ptr.vmem [resolvable:$true] %s113_s14 }
  0x2a   :  { %s5943_s19 = scalar_lea.hbm %s6968_s5, 512 }
  0x2b   :  { %p5944_p2 = scmp.ne.s32.totalorder %s6968_s5, %s5943_s19  ;;  %p5947_p3 = scmp.lt.u32.totalorder %s5943_s19, %s6968_s5 }
  0x2d   :  { %p5949_p4 = pnand %p5947_p3, %p5944_p2 }
  0x2f   :  { %5952 = shalt.err (!%p5949_p4)
}
  0x30   :  { %s5953_s3 = scalar_lea.vmem %s92_s30, 512  ;;  %p5958_p6 = scmp.lt.s32.totalorder %s92_s30, %s92_s30 }
  0x31   :  { %p5954_p5 = scmp.ne.s32.totalorder %s92_s30, %s5953_s3  ;;  %p5959_p7 = scmp.lt.s32.totalorder %s5953_s3, %s5953_s3 }
  0x33   :  { %p5960_p8 = por %p5959_p7, %p5958_p6 }
  0x35   :  { %p5961_p9 = pnand %p5960_p8, %p5954_p5 }
  0x37   :  { %5964 = shalt.err (!%p5961_p9)
}
  0x38   :  { %97 = dma.hbm_to_vmem [thread:$0]  %s6968_s5, 512, %s92_s30, [#allocation12], %s6203_s15, %s6203_s15, %s6204_s16  }
  0x39   :  { %s5965_s1 = scalar_lea.hbm %s6970_s7, 1024 }
  0x3a   :  { %p5966_p10 = scmp.ne.s32.totalorder %s6970_s7, %s5965_s1  ;;  %p5969_p11 = scmp.lt.u32.totalorder %s5965_s1, %s6970_s7 }
  0x3c   :  { %p5971_p12 = pnand %p5969_p11, %p5966_p10 }
  0x3e   :  { %5974 = shalt.err (!%p5971_p12)
}
  0x3f   :  { %s5975_s18 = scalar_lea.vmem %s6325_s14, 1024  ;;  %p5980_p0 = scmp.lt.s32.totalorder %s6325_s14, %s6325_s14 }
  0x40   :  { %p5976_p13 = scmp.ne.s32.totalorder %s6325_s14, %s5975_s18  ;;  %p5981_p1 = scmp.lt.s32.totalorder %s5975_s18, %s5975_s18 }
  0x42   :  { %p5982_p2 = por %p5981_p1, %p5980_p0 }
  0x44   :  { %p5983_p3 = pnand %p5982_p2, %p5976_p13 }
  0x46   :  { %5986 = shalt.err (!%p5983_p3)
}
  0x47   :  { %119 = dma.hbm_to_vmem [thread:$0]  %s6970_s7, 1024, %s6325_s14, [#allocation15], %s6203_s15, %s6203_s15, %s6204_s16  }
  0x48   :  { %s6207_s19 = smov [#allocation17]   ;;  %s6208_s21 = smov [#allocation2]  }
  0x49   :  { %s136_s20 = sshll.u32 %s6207_s19, 4  ;;  %s31_s23 = sshll.u32 %s6208_s21, 4  ;;  %s137_s20 = int_to_ptr.vmem [resolvable:$true] %s136_s20  ;;  %s6362_s23 = int_to_ptr.vmem [resolvable:$true] %s31_s23 }
  0x4a   :  { %s5987_s24 = scalar_lea.hbm %s6972_s9, 16 }
  0x4b   :  { %p5988_p4 = scmp.ne.s32.totalorder %s6972_s9, %s5987_s24  ;;  %p5991_p5 = scmp.lt.u32.totalorder %s5987_s24, %s6972_s9 }
  0x4d   :  { %p5993_p6 = pnand %p5991_p5, %p5988_p4 }
  0x4f   :  { %5996 = shalt.err (!%p5993_p6)
}
  0x50   :  { %s5997_s7 = scalar_lea.vmem %s137_s20, 16  ;;  %s6001_s14 = scalar_lea.vmem %s137_s20, 32 }
  0x51   :  { %p5998_p7 = scmp.ne.s32.totalorder %s137_s20, %s5997_s7  ;;  %p6002_p8 = scmp.lt.s32.totalorder %s137_s20, %s137_s20 }
  0x52   :  { %p6003_p9 = scmp.lt.s32.totalorder %s6001_s14, %s5997_s7 }
  0x54   :  { %p6004_p10 = por %p6003_p9, %p6002_p8 }
  0x56   :  { %p6005_p11 = pnand %p6004_p10, %p5998_p7 }
  0x58   :  { %6008 = shalt.err (!%p6005_p11)
}
  0x59   :  { %139 = dma.hbm_to_vmem [thread:$0]  %s6972_s9, 16, %s137_s20, [#allocation18]  }
  0x5a   :  { %s6009_s18 = scalar_lea.hbm %s6963_s0, 256 }
  0x5b   :  { %p6010_p12 = scmp.ne.s32.totalorder %s6963_s0, %s6009_s18  ;;  %p6013_p13 = scmp.lt.u32.totalorder %s6009_s18, %s6963_s0 }
  0x5d   :  { %p6015_p0 = pnand %p6013_p13, %p6010_p12 }
  0x5f   :  { %6018 = shalt.err (!%p6015_p0)
}
  0x60   :  { %s6019_s25 = scalar_lea.vmem %s6362_s23, 256  ;;  %p6024_p2 = scmp.lt.s32.totalorder %s6362_s23, %s6362_s23 }
  0x61   :  { %p6020_p1 = scmp.ne.s32.totalorder %s6362_s23, %s6019_s25  ;;  %p6025_p3 = scmp.lt.s32.totalorder %s6019_s25, %s6019_s25 }
  0x63   :  { %p6026_p4 = por %p6025_p3, %p6024_p2 }
  0x65   :  { %p6027_p5 = pnand %p6026_p4, %p6020_p1 }
  0x67   :  { %6030 = shalt.err (!%p6027_p5)
}
  0x68   :  { %37 = dma.hbm_to_vmem [thread:$0]  %s6963_s0, 256, %s6362_s23, [#allocation3], %s6203_s15, %s6203_s15, %s6204_s16  }
  0x69   :  { %s6209_s3 = smov [#allocation7]   ;;  %s6031_s28 = scalar_lea.hbm %s6965_s2, 32 }
  0x6a   :  { %s55_s24 = sshll.u32 %s6209_s3, 4  ;;  %p6032_p6 = scmp.ne.s32.totalorder %s6965_s2, %s6031_s28  ;;  %s56_s24 = int_to_ptr.vmem [resolvable:$true] %s55_s24 }
  0x6b   :  { %p6035_p7 = scmp.lt.u32.totalorder %s6031_s28, %s6965_s2 }
  0x6d   :  { %p6037_p8 = pnand %p6035_p7, %p6032_p6 }
  0x6f   :  { %6040 = shalt.err (!%p6037_p8)
}
  0x70   :  { %s6041_s29 = scalar_lea.vmem %s56_s24, 32  ;;  %p6046_p10 = scmp.lt.s32.totalorder %s56_s24, %s56_s24 }
  0x71   :  { %p6042_p9 = scmp.ne.s32.totalorder %s56_s24, %s6041_s29  ;;  %p6047_p11 = scmp.lt.s32.totalorder %s6041_s29, %s6041_s29 }
  0x73   :  { %p6048_p12 = por %p6047_p11, %p6046_p10 }
  0x75   :  { %p6049_p13 = pnand %p6048_p12, %p6042_p9 }
  0x77   :  { %6052 = shalt.err (!%p6049_p13)
}
  0x78   :  { %s6210_s0 = smov 16   ;;  %s6211_s23 = smov 1  }
  0x79   :  { %61 = dma.hbm_to_vmem [thread:$0]  %s6965_s2, 32, %s56_s24, [#allocation6], %s6210_s0, %s6210_s0, %s6211_s23  }
  0x7a   :  { %s6212_s18 = smov [#allocation10]   ;;  %s6213_s30 = smov [#allocation13]  }
  0x7b   :  { %s79_s5 = sshll.u32 %s6212_s18, 4  ;;  %s104_s19 = sshll.u32 %s6213_s30, 4  ;;  %s80_s5 = int_to_ptr.vmem [resolvable:$true] %s79_s5  ;;  %s105_s19 = int_to_ptr.vmem [resolvable:$true] %s104_s19 }
  0x7c   :  { %s6053_s9 = scalar_lea.hbm %s6967_s4, 512 }
  0x7d   :  { %p6054_p0 = scmp.ne.s32.totalorder %s6967_s4, %s6053_s9  ;;  %p6057_p1 = scmp.lt.u32.totalorder %s6053_s9, %s6967_s4 }
  0x7f   :  { %p6059_p2 = pnand %p6057_p1, %p6054_p0 }
  0x81   :  { %6062 = shalt.err (!%p6059_p2)
}
  0x82   :  { %s6063_s2 = scalar_lea.vmem %s80_s5, 512  ;;  %p6068_p4 = scmp.lt.s32.totalorder %s80_s5, %s80_s5 }
  0x83   :  { %p6064_p3 = scmp.ne.s32.totalorder %s80_s5, %s6063_s2  ;;  %p6069_p5 = scmp.lt.s32.totalorder %s6063_s2, %s6063_s2 }
  0x85   :  { %p6070_p6 = por %p6069_p5, %p6068_p4 }
  0x87   :  { %p6071_p7 = pnand %p6070_p6, %p6064_p3 }
  0x89   :  { %6074 = shalt.err (!%p6071_p7)
}
  0x8a   :  { %85 = dma.hbm_to_vmem [thread:$0]  %s6967_s4, 512, %s80_s5, [#allocation9], %s6203_s15, %s6203_s15, %s6204_s16  }
  0x8b   :  { %s6075_s14 = scalar_lea.hbm %s6969_s6, 16 }
  0x8c   :  { %p6076_p8 = scmp.ne.s32.totalorder %s6969_s6, %s6075_s14  ;;  %p6079_p9 = scmp.lt.u32.totalorder %s6075_s14, %s6969_s6 }
  0x8e   :  { %p6081_p10 = pnand %p6079_p9, %p6076_p8 }
  0x90   :  { %6084 = shalt.err (!%p6081_p10)
}
  0x91   :  { %s6085_s13 = scalar_lea.vmem %s105_s19, 16  ;;  %s6089_s17 = scalar_lea.vmem %s105_s19, 32 }
  0x92   :  { %p6086_p11 = scmp.ne.s32.totalorder %s105_s19, %s6085_s13  ;;  %p6090_p12 = scmp.lt.s32.totalorder %s105_s19, %s105_s19 }
  0x93   :  { %p6091_p13 = scmp.lt.s32.totalorder %s6089_s17, %s6085_s13 }
  0x95   :  { %p6092_p0 = por %p6091_p13, %p6090_p12 }
  0x97   :  { %p6093_p1 = pnand %p6092_p0, %p6086_p11 }
  0x99   :  { %6096 = shalt.err (!%p6093_p1)
}
  0x9a   :  { %107 = dma.hbm_to_vmem [thread:$0]  %s6969_s6, 16, %s105_s19, [#allocation12]  }
  0x9b   :  { %s6214_s5 = smov [#allocation16]   ;;  %s6215_s21 = smov [#allocation19]  }
  0x9c   :  { %s126_s30 = sshll.u32 %s6214_s5, 4  ;;  %s146_s25 = sshll.u32 %s6215_s21, 4  ;;  %s127_s30 = int_to_ptr.vmem [resolvable:$true] %s126_s30  ;;  %s147_s25 = int_to_ptr.vmem [resolvable:$true] %s146_s25 }
  0x9d   :  { %s6097_s3 = scalar_lea.hbm %s6971_s8, 16 }
  0x9e   :  { %p6098_p2 = scmp.ne.s32.totalorder %s6971_s8, %s6097_s3  ;;  %p6101_p3 = scmp.lt.u32.totalorder %s6097_s3, %s6971_s8 }
  0xa0   :  { %p6103_p4 = pnand %p6101_p3, %p6098_p2 }
  0xa2   :  { %6106 = shalt.err (!%p6103_p4)
}
  0xa3   :  { %s6107_s6 = scalar_lea.vmem %s127_s30, 16  ;;  %s6111_s19 = scalar_lea.vmem %s127_s30, 32 }
  0xa4   :  { %p6108_p5 = scmp.ne.s32.totalorder %s127_s30, %s6107_s6  ;;  %p6112_p6 = scmp.lt.s32.totalorder %s127_s30, %s127_s30 }
  0xa5   :  { %p6113_p7 = scmp.lt.s32.totalorder %s6111_s19, %s6107_s6 }
  0xa7   :  { %p6114_p8 = por %p6113_p7, %p6112_p6 }
  0xa9   :  { %p6115_p9 = pnand %p6114_p8, %p6108_p5 }
  0xab   :  { %6118 = shalt.err (!%p6115_p9)
}
  0xac   :  { %129 = dma.hbm_to_vmem [thread:$0]  %s6971_s8, 16, %s127_s30, [#allocation15]  }
  0xad   :  { %s6119_s22 = scalar_lea.hbm %s6973_s10, 16 }
  0xae   :  { %p6120_p10 = scmp.ne.s32.totalorder %s6973_s10, %s6119_s22  ;;  %p6123_p11 = scmp.lt.u32.totalorder %s6119_s22, %s6973_s10 }
  0xb0   :  { %p6125_p12 = pnand %p6123_p11, %p6120_p10 }
  0xb2   :  { %6128 = shalt.err (!%p6125_p12)
}
  0xb3   :  { %s6129_s17 = scalar_lea.vmem %s147_s25, 16  ;;  %s6133_s4 = scalar_lea.vmem %s147_s25, 32 }
  0xb4   :  { %p6130_p13 = scmp.ne.s32.totalorder %s147_s25, %s6129_s17  ;;  %p6134_p0 = scmp.lt.s32.totalorder %s147_s25, %s147_s25 }
  0xb5   :  { %p6135_p1 = scmp.lt.s32.totalorder %s6133_s4, %s6129_s17 }
  0xb7   :  { %p6136_p2 = por %p6135_p1, %p6134_p0 }
  0xb9   :  { %p6137_p3 = pnand %p6136_p2, %p6130_p13 }
  0xbb   :  { %6140 = shalt.err (!%p6137_p3)
}
  0xbc   :  { %149 = dma.hbm_to_vmem [thread:$0]  %s6973_s10, 16, %s147_s25, [#allocation18]  }
  0xbd   :  { %6185 = dma.done.wait [#allocation3], 256  }
  0xbe   :  { %6186 = vsyncadd [#allocation3], 4294967040 }
  0xbf   :  { %6187 = dma.done.wait [#allocation6], 544  }
  0xc0   :  { %6188 = vsyncadd [#allocation6], 4294966752 }
  0xc1   :  { %6189 = dma.done.wait [#allocation9], 1024  }
  0xc2   :  { %6190 = vsyncadd [#allocation9], 4294966272 }
  0xc3   :  { %6191 = dma.done.wait [#allocation12], 528  }
  0xc4   :  { %6192 = vsyncadd [#allocation12], 4294966768 }
  0xc5   :  { %6193 = dma.done.wait [#allocation15], 1040  }
  0xc6   :  { %6194 = vsyncadd [#allocation15], 4294966256 }
  0xc7   :  { %6195 = dma.done.wait [#allocation18], 32  }
  0xc8   :  { %6196 = vsyncadd [#allocation18], 4294967264  ;;  %vm193_vm0 = vcmask 261120   ;;  %v189_v0 = vld [vmem:[#allocation8] sm:$0xff]  ;;  %v190_v1 = vld [vmem:[#allocation8 + $0x8] sm:$0xff]  ;;  %s6216_s10 = smov 96  }
  0xc9   :  { %v191_v2 = vld [vmem:[#allocation8 + $0x10] sm:$0xff]  ;;  %v201_v3 = vand.u32 4294901760, %v189_v0  ;;  %v204_v4 = vand.u32 4294901760, %v190_v1  ;;  %v192_v5 = vld [vmem:[#allocation8 + $0x18] sm:$0xff]  ;;  %v6461_v12 = vld [vmem:[#allocation10] sm:$0xff]  ;;  %vm6218_vm1 = vmmov 0  }
  0xca   :  { %v207_v6 = vand.u32 4294901760, %v191_v2  ;;  %v183_v7 = vld [vmem:[#allocation2] sm:$0xff]  ;;  %v184_v8 = vld [vmem:[#allocation2 + $0x8] sm:$0xff]  ;;  %v210_v9 = vand.u32 4294901760, %v192_v5  ;;  %v745_v20 = vand.u32 4294901760, %v6461_v12  ;;  %v185_v47 = vld [vmem:[#allocation5] sm:$0xff] }
  0xcb   :  { %v195_v10 = vsel %vm193_vm0, %v183_v7, 0  ;;  %v198_v11 = vsel %vm193_vm0, %v184_v8, 0  ;;  %v6463_v13 = vld [vmem:[#allocation10 + $0x8] sm:$0xff]  ;;  %v6465_v14 = vpack.c.bf16 %v204_v4, %v201_v3  ;;  %v6471_v17 = vsub.f32 %v189_v0, %v201_v3  ;;  %v6515_v37 = vld [vmem:[#allocation10 + $0x10] sm:$0xff]  ;;  %v6534_v46 = vld [vmem:[#allocation10 + $0x18] sm:$0xff]  ;;  %s6221_s5 = smov [#allocation21]  }
  0xcc   :  { %v6467_v15 = vand.u32 4294901760, %v195_v10  ;;  %v6469_v16 = vand.u32 4294901760, %v198_v11  ;;  %v6473_v18 = vpack.c.bf16 %v210_v9, %v207_v6  ;;  %v6475_v19 = vsub.f32 %v190_v1, %v204_v4  ;;  %v187_v7 = vld [vmem:[#allocation5 + $0x10] sm:$0xff]  ;;  %s4644_s30 = sshll.u32 %s6221_s5, 4  ;;  %s4645_s30 = int_to_ptr.vmem [resolvable:$true] %s4644_s30 }
  0xcd   :  { %v748_v21 = vand.u32 4294901760, %v6463_v13  ;;  %5420 = vmatprep.subr.bf16.mxu0 %v6465_v14  ;;  %v292_v24 = vand.u32 4294901760, %v6471_v17  ;;  %v6487_v25 = vsub.f32 %v191_v2, %v207_v6  ;;  %v6494_v27 = vsub.f32 %v6461_v12, %v745_v20  ;;  %v186_v6 = vld [vmem:[#allocation5 + $0x8] sm:$0xff]  ;;  %s6141_s21 = scalar_lea.vmem %s4645_s30, 256  ;;  %p6146_p5 = scmp.lt.s32.totalorder %s4645_s30, %s4645_s30 }
  0xce   :  { %v6481_v22 = vsub.f32 %v195_v10, %v6467_v15  ;;  %v6484_v23 = vsub.f32 %v198_v11, %v6469_v16  ;;  %5422 = vmatpush3.bf16.msra.mxu0 %v6465_v14  ;;  %v299_v26 = vand.u32 4294901760, %v6475_v19  ;;  %v6513_v36 = vsub.f32 %v192_v5, %v210_v9  ;;  %p6142_p4 = scmp.ne.s32.totalorder %s4645_s30, %s6141_s21  ;;  %p6147_p6 = scmp.lt.s32.totalorder %s6141_s21, %s6141_s21 }
  0xcf   :  { %v6499_v28 = vsub.f32 %v6463_v13, %v748_v21  ;;  %5424 = vmatprep.subr.bf16.mxu0 %v6473_v18  ;;  %v293_v31 = vsub.f32 %v6471_v17, %v292_v24  ;;  %v306_v32 = vand.u32 4294901760, %v6487_v25  ;;  %v856_v34 = vand.u32 4294901760, %v6494_v27 }
  0xd0   :  { %v271_v29 = vand.u32 4294901760, %v6481_v22  ;;  %v281_v30 = vand.u32 4294901760, %v6484_v23  ;;  %v300_v33 = vsub.f32 %v6475_v19, %v299_v26  ;;  %v313_v45 = vand.u32 4294901760, %v6513_v36  ;;  %p6148_p7 = por %p6147_p6, %p6146_p5 }
  0xd1   :  { %v863_v35 = vand.u32 4294901760, %v6499_v28  ;;  %v294_v40 = vand.u32 4294901760, %v293_v31  ;;  %v307_v41 = vsub.f32 %v6487_v25, %v306_v32  ;;  %v857_v43 = vsub.f32 %v6494_v27, %v856_v34 }
  0xd2   :  { %v272_v38 = vsub.f32 %v6481_v22, %v271_v29  ;;  %v282_v39 = vsub.f32 %v6484_v23, %v281_v30  ;;  %5426 = vmatpush3.bf16.msra.mxu0 %v6473_v18  ;;  %v301_v42 = vand.u32 4294901760, %v300_v33  ;;  %v751_v51 = vand.u32 4294901760, %v6515_v37  ;;  %p6149_p8 = pnand %p6148_p7, %p6142_p4 }
  0xd3   :  { %v864_v44 = vsub.f32 %v6499_v28, %v863_v35  ;;  %v308_v50 = vand.u32 4294901760, %v307_v41  ;;  %v858_v53 = vand.u32 4294901760, %v857_v43  ;;  %v314_v55 = vsub.f32 %v6513_v36, %v313_v45 }
  0xd4   :  { %v273_v48 = vand.u32 4294901760, %v272_v38  ;;  %v283_v49 = vand.u32 4294901760, %v282_v39  ;;  %v5427_v52 = vpack.c.bf16 %v301_v42, %v294_v40  ;;  %v754_v56 = vand.u32 4294901760, %v6534_v46  ;;  %v188_v38 = vld [vmem:[#allocation5 + $0x18] sm:$0xff] }
  0xd5   :  { %v865_v54 = vand.u32 4294901760, %v864_v44  ;;  %v6544_v57 = vsub.f32 %v6515_v37, %v751_v51  ;;  %v733_v58 = vsel %vm193_vm0, %v185_v47, 0  ;;  %v315_v60 = vand.u32 4294901760, %v314_v55 }
  0xd6   :  { %4929 = vmatprep.mubr.f32.mxu0 %v273_v48  ;;  %5428 = vmatprep.subr.bf16.mxu0 %v5427_v52  ;;  %v6547_v61 = vand.u32 4294901760, %v733_v58  ;;  %v6553_v63 = vsub.f32 %v6534_v46, %v754_v56  ;;  %v5435_v1 = vpack.c.bf16 %v6475_v19, %v6471_v17  ;;  %v5439_v8 = vpack.c.bf16 %v6513_v36, %v6487_v25 }
  0xd7   :  { %4930 = vmatmul.mubr.f32.vlgmr.msra.gmra.mrb[0].mxu0 %v283_v49  ;;  %v5475_v59 = vpack.c.bf16 %v865_v54, %v858_v53  ;;  %v870_v62 = vand.u32 4294901760, %v6544_v57  ;;  %v5431_v0 = vpack.c.bf16 %v315_v60, %v308_v50  ;;  %v736_v10 = vsel %vm193_vm0, %v186_v6, 0 }
  0xd8   :  { %5430 = vmatpush3.bf16.msra.mxu0 %v5427_v52  ;;  %4940 = vmatprep.mubr.f32.mxu0 %v6467_v15  ;;  %v877_v3 = vand.u32 4294901760, %v6553_v63  ;;  %v5483_v31 = vpack.c.bf16 %v6499_v28, %v6494_v27  ;;  %v739_v33 = vsel %vm193_vm0, %v187_v7, 0  ;;  %v6574_v39 = vand.u32 4294901760, %v736_v10 }
  0xd9   :  { %5476 = vmatprep.subr.bf16.mxu1 %v5475_v59  ;;  %5009 = vmatprep.mubr.f32.mxu1 %v6547_v61  ;;  %v871_v2 = vsub.f32 %v6544_v57, %v870_v62  ;;  %v6576_v40 = vand.u32 4294901760, %v739_v33  ;;  %v742_v41 = vsel %vm193_vm0, %v188_v38, 0  ;;  %v5487_v42 = vpack.c.bf16 %v6553_v63, %v6544_v57 }
  0xda   :  { %5478 = vmatpush3.bf16.msra.mxu1 %v5475_v59  ;;  %5432 = vmatprep.subr.bf16.mxu0 %v5431_v0  ;;  %v878_v5 = vsub.f32 %v6553_v63, %v877_v3  ;;  %v6583_v43 = vand.u32 4294901760, %v742_v41  ;;  %v814_v44 = vsub.f32 %v733_v58, %v6547_v61  ;;  %v5467_v47 = vpack.c.bf16 %v748_v21, %v745_v20 }
  0xdb   :  { %v872_v4 = vand.u32 4294901760, %v871_v2  ;;  %v824_v48 = vsub.f32 %v736_v10, %v6574_v39  ;;  %v5451_v12 = vpack.c.bf16 %v299_v26, %v292_v24  ;;  %v834_v13 = vsub.f32 %v739_v33, %v6576_v40 }
  0xdc   :  { %5434 = vmatpush3.bf16.msra.mxu0 %v5431_v0  ;;  %v879_v9 = vand.u32 4294901760, %v878_v5  ;;  %v5471_v20 = vpack.c.bf16 %v754_v56, %v751_v51  ;;  %v844_v21 = vsub.f32 %v742_v41, %v6583_v43  ;;  %v5455_v17 = vpack.c.bf16 %v313_v45, %v306_v32 }
  0xdd   :  { %5436 = vmatprep.subr.bf16.mxu0 %v5435_v1  ;;  %v815_v19 = vand.u32 4294901760, %v814_v44  ;;  %v825_v24 = vand.u32 4294901760, %v824_v48  ;;  %v835_v25 = vand.u32 4294901760, %v834_v13  ;;  %v6219_v5 = vmov 0.0  }
  0xde   :  { %v5479_v11 = vpack.c.bf16 %v879_v9, %v872_v4  ;;  %v845_v26 = vand.u32 4294901760, %v844_v21  ;;  %v6217_v4 = vmov 0.0|0.0  }
  0xdf   :  { %4941 = vmatmul.mubr.f32.vlgmr.msra.gmra.mrb[0].mxu0 %v6469_v16  ;;  %v816_v27 = vsub.f32 %v814_v44, %v815_v19 }
  0xe0   :  { %5438 = vmatpush3.bf16.msra.mxu0 %v5435_v1  ;;  %4951 = vmatprep.mubr.f32.mxu0 %v6481_v22  ;;  %v5499_v22 = vpack.c.bf16 %v863_v35, %v856_v34 }
  0xe1   :  { %5440 = vmatprep.subr.bf16.mxu0 %v5439_v8  ;;  %5480 = vmatprep.subr.bf16.mxu1 %v5479_v11  ;;  %v817_v28 = vand.u32 4294901760, %v816_v27 }
  0xe2   :  { %5482 = vmatpush3.bf16.msra.mxu1 %v5479_v11 }
  0xe3   :  { %5484 = vmatprep.subr.bf16.mxu1 %v5483_v31 }
  0xe4   :  { %5442 = vmatpush3.bf16.msra.mxu0 %v5439_v8 }
  0xe5   :  { %5444 = vmatprep.subr.bf16.mxu0 %v6465_v14  ;;  %5010 = vmatmul.mubr.f32.vlgmr.msra.gmra.mrb[0].mxu1 %v6574_v39 }
  0xe6   :  { %5486 = vmatpush3.bf16.msra.mxu1 %v5483_v31  ;;  %5012 = vmatprep.mubr.f32.mxu1 %v6576_v40 }
  0xe7   :  { %5488 = vmatprep.subr.bf16.mxu1 %v5487_v42  ;;  %4952 = vmatmul.mubr.f32.vlgmr.msra.gmra.mrb[0].mxu0 %v6484_v23  ;;  %v5503_v23 = vpack.c.bf16 %v877_v3, %v870_v62 }
  0xe8   :  { %5446 = vmatpush3.bf16.msra.mxu0 %v6465_v14  ;;  %4962 = vmatprep.mubr.f32.mxu0 %v271_v29  ;;  %v846_v29 = vsub.f32 %v844_v21, %v845_v26 }
  0xe9   :  { %5013 = vmatmul.mubr.f32.gmra.mrb[2].mxu1 %v6583_v43  ;;  %5448 = vmatprep.subr.bf16.mxu0 %v6473_v18 }
  0xea   :  { %5490 = vmatpush3.bf16.msra.mxu1 %v5487_v42  ;;  %5023 = vmatprep.mubr.f32.mxu1 %v814_v44 }
  0xeb   :  { %5492 = vmatprep.subr.bf16.mxu1 %v5467_v47 }
  0xec   :  { %5450 = vmatpush3.bf16.msra.mxu0 %v6473_v18 }
  0xed   :  { %5024 = vmatmul.mubr.f32.vlgmr.msra.gmra.mrb[0].mxu1 %v824_v48  ;;  %5452 = vmatprep.subr.bf16.mxu0 %v5451_v12 }
  0xee   :  { %5494 = vmatpush3.bf16.msra.mxu1 %v5467_v47  ;;  %5026 = vmatprep.mubr.f32.mxu1 %v834_v13 }
  0xef   :  { %5496 = vmatprep.subr.bf16.mxu1 %v5471_v20  ;;  %4963 = vmatmul.mubr.f32.vlgmr.msra.gmra.mrb[0].mxu0 %v281_v30 }
  0xf0   :  { %5454 = vmatpush3.bf16.msra.mxu0 %v5451_v12  ;;  %4973 = vmatprep.mubr.f32.mxu0 %v6467_v15 }
  0xf1   :  { %5027 = vmatmul.mubr.f32.gmra.mrb[2].mxu1 %v844_v21  ;;  %5456 = vmatprep.subr.bf16.mxu0 %v5455_v17 }
  0xf2   :  { %5498 = vmatpush3.bf16.msra.mxu1 %v5471_v20  ;;  %5037 = vmatprep.mubr.f32.mxu1 %v815_v19 }
  0xf3   :  { %5500 = vmatprep.subr.bf16.mxu1 %v5499_v22 }
  0xf4   :  { %5458 = vmatpush3.bf16.msra.mxu0 %v5455_v17 }
  0xf5   :  { %5038 = vmatmul.mubr.f32.vlgmr.msra.gmra.mrb[0].mxu1 %v825_v24  ;;  %5460 = vmatprep.subr.bf16.mxu0 %v6465_v14 }
  0xf6   :  { %5502 = vmatpush3.bf16.msra.mxu1 %v5499_v22  ;;  %5040 = vmatprep.mubr.f32.mxu1 %v835_v25 }
  0xf7   :  { %5504 = vmatprep.subr.bf16.mxu1 %v5503_v23  ;;  %4974 = vmatmul.mubr.f32.vlgmr.msra.gmra.mrb[0].mxu0 %v6469_v16 }
  0xf8   :  { %5462 = vmatpush3.bf16.msra.mxu0 %v6465_v14  ;;  %4984 = vmatprep.mubr.f32.mxu0 %v6467_v15  ;;  %v826_v14 = vsub.f32 %v824_v48, %v825_v24  ;;  %v836_v15 = vsub.f32 %v834_v13, %v835_v25 }
  0xf9   :  { %5041 = vmatmul.mubr.f32.gmra.mrb[2].mxu1 %v845_v26  ;;  %5464 = vmatprep.subr.bf16.mxu0 %v6473_v18 }
  0xfa   :  { %5506 = vmatpush3.bf16.msra.mxu1 %v5503_v23  ;;  %5051 = vmatprep.mubr.f32.mxu1 %v6547_v61  ;;  %v837_v30 = vand.u32 4294901760, %v836_v15 }
  0xfb   :  { %5508 = vmatprep.subr.bf16.mxu1 %v5467_v47 }
  0xfc   :  { %5466 = vmatpush3.bf16.msra.mxu0 %v6473_v18  ;;  %v827_v18 = vand.u32 4294901760, %v826_v14 }
  0xfd   :  { %5052 = vmatmul.mubr.f32.vlgmr.msra.gmra.mrb[0].mxu1 %v6574_v39  ;;  %5468 = vmatprep.subr.bf16.mxu0 %v5467_v47 }
  0xfe   :  { %5510 = vmatpush3.bf16.msra.mxu1 %v5467_v47  ;;  %5054 = vmatprep.mubr.f32.mxu1 %v6576_v40 }
  0xff   :  { %5512 = vmatprep.subr.bf16.mxu1 %v5471_v20  ;;  %4985 = vmatmul.mubr.f32.vlgmr.msra.gmra.mrb[0].mxu0 %v6469_v16  ;;  %v847_v16 = vand.u32 4294901760, %v846_v29 }
 0x100   :  { %5470 = vmatpush3.bf16.msra.mxu0 %v5467_v47  ;;  %4995 = vmatprep.mubr.f32.mxu0 %v817_v28 }
 0x101   :  { %5055 = vmatmul.mubr.f32.gmra.mrb[2].mxu1 %v6583_v43  ;;  %5472 = vmatprep.subr.bf16.mxu0 %v5471_v20 }
 0x102   :  { %5514 = vmatpush3.bf16.msra.mxu1 %v5471_v20  ;;  %5065 = vmatprep.mubr.f32.mxu1 %v6547_v61 }
 0x103   :  { %5533 = vmatprep.subr.bf16.mxu1 %v6217_v4 }
 0x104   :  { %5474 = vmatpush3.bf16.msra.mxu0 %v5471_v20 }
 0x105   :  { %5066 = vmatmul.mubr.f32.vlgmr.msra.gmra.mrb[0].mxu1 %v6574_v39  ;;  %5515 = vmatprep.subr.bf16.mxu0 %v6217_v4 }
 0x106   :  { %5068 = vmatprep.mubr.f32.mxu1 %v6576_v40 }
 0x107   :  { %4996 = vmatmul.mubr.f32.vlgmr.msra.gmra.mrb[2].mxu0 %v827_v18 }
 0x108   :  { %4998 = vmatprep.mubr.f32.mxu0 %v837_v30 }
 0x109   :  { %5069 = vmatmul.mubr.f32.gmra.mrb[2].mxu1 %v6583_v43 }
 0x10a   :  { %5117 = vmatprep.mubr.msk.f32.mxu1 %vm6218_vm1, %v6219_v5 }
 0x10b   :  { %4999 = vmatmul.mubr.f32.gmra.mrb[4].mxu0 %v847_v16 }
 0x10c   :  { %5075 = vmatprep.mubr.msk.f32.mxu0 %vm6218_vm1, %v6219_v5 }
 0x1d2   :  { %v6639_v32 = vpop.f32.mrb[0].mxu0 }
 0x1d3   :  { %v6641_v34 = vpop.f32.mrb[1].mxu0  ;;  %v1359_v0 = vmul.f32 %v6639_v32, %v6639_v32 }
 0x1d4   :  { %v1358_v35 = vmul.f32 %v6641_v34, %v6641_v34 }
 0x1d5   :  { %v1363_v3 = vsel %vm193_vm0, %v1359_v0, 0.0 }
 0x1d6   :  { %v1360_v36 = vsel %vm193_vm0, %v1358_v35, 0.0 }
 0x1d7   :  { %1361 = vadd.xlane.f32.xlu1 %v1360_v36 }
 0x1d8   :  { %v5067_v37 = vpop.f32.mrb[0].mxu1 }
 0x1d9   :  { %v1336_v45 = vpop.f32.mrb[1].mxu1 }
 0x1da   :  { %v4997_v46 = vpop.f32.mrb[2].mxu0 }
 0x1db   :  { %v6646_v49 = vadd.f32 %v5067_v37, %v4997_v46  ;;  %v819_v50 = vpop.f32.mrb[3].mxu0 }
 0x1dc   :  { %v5070_v51 = vpop.f32.mrb[2].mxu1  ;;  %v6648_v52 = vadd.f32 %v1336_v45, %v819_v50 }
 0x1dd   :  { %v1348_v53 = vpop.f32.mrb[3].mxu1  ;;  %v1387_v54 = vmul.f32 %v6646_v49, %v6646_v49 }
 0x1de   :  { %v5000_v55 = vpop.f32.mrb[4].mxu0  ;;  %v1386_v59 = vmul.f32 %v6648_v52, %v6648_v52 }
 0x1df   :  { %v6652_v56 = vadd.f32 %v5070_v51, %v5000_v55  ;;  %v839_v57 = vpop.f32.mrb[5].mxu0  ;;  %v1393_v58 = vsel %vm193_vm0, %v1387_v54, 0.0 }
 0x1e0   :  { %v6657_v60 = vadd.f32 %v1348_v53, %v839_v57  ;;  %1394 = vadd.xlane.f32.xlu0 %v1393_v58  ;;  %v1390_v62 = vsel %vm193_vm0, %v1386_v59, 0.0 }
 0x1e1   :  { %v1389_v63 = vmul.f32 %v6652_v56, %v6652_v56 }
 0x1e2   :  { %v1388_v61 = vmul.f32 %v6657_v60, %v6657_v60 }
 0x1e3   :  { %v1399_v2 = vsel %vm193_vm0, %v1389_v63, 0.0 }
 0x1e4   :  { %1391 = vadd.xlane.f32.xlu0 %v1390_v62  ;;  %v1396_v1 = vsel %vm193_vm0, %v1388_v61, 0.0 }
 0x1e5   :  { %1397 = vadd.xlane.f32.xlu1 %v1396_v1 }
 0x1e8   :  { %1400 = vadd.xlane.f32.xlu0 %v1399_v2 }
 0x1e9   :  { %1364 = vadd.xlane.f32.xlu1 %v1363_v3 }
 0x1fa   :  { %1448 = vrot.lane.b32.xlu1 %v1387_v54, %s6216_s10 }
 0x1fe   :  { %1446 = vrot.lane.b32.xlu0 %v1386_v59, %s6216_s10  ;;  %1450 = vrot.lane.b32.xlu1 %v1388_v61, %s6216_s10 }
 0x202   :  { %1452 = vrot.lane.b32.xlu1 %v1389_v63, %s6216_s10 }
 0x264   :  { %v1362_v6 = vpop.xlane.xlu1 %1361 }
 0x265   :  { %5847 = vrsqrt.f32 %v1362_v6  ;;  %vm1368_vm2 = vcmp.eq.f32.partialorder %v1362_v6, inf  ;;  %v1371_v10 = vand.u32 2147483648, %v1362_v6  ;;  %vm1370_vm3 = vcmp.eq.f32.partialorder %v1362_v6, 0.0 }
 0x26d   :  { %v1395_v7 = vpop.xlane.xlu0 %1394 }
 0x26e   :  { %5849 = vrsqrt.f32 %v1395_v7  ;;  %vm1411_vm4 = vcmp.eq.f32.partialorder %v1395_v7, inf  ;;  %v1414_v44 = vand.u32 2147483648, %v1395_v7  ;;  %vm1413_vm5 = vcmp.eq.f32.partialorder %v1395_v7, 0.0 }
 0x26f   :  { %v5848_v8 = vpop.eup %5847 }
 0x270   :  { %v1367_v9 = vmul.f32 %v5848_v8, %v1362_v6 }
 0x271   :  { %v1392_v11 = vpop.xlane.xlu0 %1391 }
 0x272   :  { %v1369_v31 = vsel %vm1368_vm2, %v1362_v6, %v1367_v9  ;;  %5851 = vrsqrt.f32 %v1392_v11  ;;  %v1398_v33 = vpop.xlane.xlu1 %1397  ;;  %vm1404_vm6 = vcmp.eq.f32.partialorder %v1392_v11, inf  ;;  %vm1406_vm7 = vcmp.eq.f32.partialorder %v1392_v11, 0.0 }
 0x273   :  { %v1372_v38 = vsel %vm1370_vm3, %v1371_v10, %v1369_v31  ;;  %5853 = vrsqrt.f32 %v1398_v33  ;;  %v1407_v17 = vand.u32 2147483648, %v1392_v11  ;;  %vm1418_vm8 = vcmp.eq.f32.partialorder %v1398_v33, inf }
 0x274   :  { %v1380_v39 = vmax.f32 %v1372_v38, 1e-12  ;;  %v1421_v24 = vand.u32 2147483648, %v1398_v33  ;;  %vm1420_vm9 = vcmp.eq.f32.partialorder %v1398_v33, 0.0  ;;  %vm2464_vm3 = vcmask 130048  }
 0x275   :  { %v1401_v40 = vpop.xlane.xlu0 %1400 }
 0x276   :  { %5855 = vrcp.f32 %v1380_v39  ;;  %v1365_v41 = vpop.xlane.xlu1 %1364  ;;  %vm1425_vm10 = vcmp.eq.f32.partialorder %v1401_v40, inf  ;;  %vm1427_vm11 = vcmp.eq.f32.partialorder %v1401_v40, 0.0  ;;  %v1428_v30 = vand.u32 2147483648, %v1401_v40 }
 0x277   :  { %5857 = vrsqrt.f32 %v1401_v40  ;;  %vm1375_vm12 = vcmp.eq.f32.partialorder %v1365_v41, inf  ;;  %v1378_v37 = vand.u32 2147483648, %v1365_v41  ;;  %vm1377_vm13 = vcmp.eq.f32.partialorder %v1365_v41, 0.0 }
 0x278   :  { %v5850_v42 = vpop.eup %5849  ;;  %5859 = vrsqrt.f32 %v1365_v41 }
 0x279   :  { %v1410_v43 = vmul.f32 %v5850_v42, %v1395_v7 }
 0x27b   :  { %v1412_v47 = vsel %vm1411_vm4, %v1395_v7, %v1410_v43 }
 0x27c   :  { %v5852_v48 = vpop.eup %5851  ;;  %v1415_v12 = vsel %vm1413_vm5, %v1414_v44, %v1412_v47 }
 0x27d   :  { %v5854_v13 = vpop.eup %5853  ;;  %v1431_v20 = vmax.f32 %v1415_v12, 1e-12  ;;  %v1403_v21 = vmul.f32 %v5852_v48, %v1392_v11 }
 0x27e   :  { %v1417_v19 = vmul.f32 %v5854_v13, %v1398_v33 }
 0x27f   :  { %5861 = vrcp.f32 %v1431_v20  ;;  %v1405_v22 = vsel %vm1404_vm6, %v1392_v11, %v1403_v21 }
 0x280   :  { %v5856_v25 = vpop.eup %5855  ;;  %v1408_v23 = vsel %vm1406_vm7, %v1407_v17, %v1405_v22  ;;  %v1419_v26 = vsel %vm1418_vm8, %v1398_v33, %v1417_v19 }
 0x281   :  { %v5858_v27 = vpop.eup %5857  ;;  %v1430_v28 = vmax.f32 %v1408_v23, 1e-12  ;;  %v1422_v14 = vsel %vm1420_vm9, %v1421_v24, %v1419_v26  ;;  %v1383_v35 = vmul.f32 %v5856_v25, %v6641_v34 }
 0x282   :  { %v5860_v15 = vpop.eup %5859  ;;  %v1432_v18 = vmax.f32 %v1422_v14, 1e-12  ;;  %v1424_v29 = vmul.f32 %v5858_v27, %v1401_v40 }
 0x283   :  { %5863 = vrcp.f32 %v1430_v28  ;;  %v1374_v16 = vmul.f32 %v5860_v15, %v1365_v41  ;;  %v1511_v54 = vsel %vm193_vm0, %v1383_v35, 0 }
 0x284   :  { %5865 = vrcp.f32 %v1432_v18  ;;  %v1426_v36 = vsel %vm1425_vm10, %v1401_v40, %v1424_v29  ;;  %v6682_v58 = vand.u32 4294901760, %v1511_v54 }
 0x285   :  { %v1429_v45 = vsel %vm1427_vm11, %v1428_v30, %v1426_v36  ;;  %v1376_v46 = vsel %vm1375_vm12, %v1365_v41, %v1374_v16 }
 0x286   :  { %v1433_v50 = vmax.f32 %v1429_v45, 1e-12  ;;  %v1379_v51 = vsel %vm1377_vm13, %v1378_v37, %v1376_v46  ;;  %v6687_v0 = vsub.f32 %v1511_v54, %v6682_v58  ;;  %v2452_v46 = vlaneseq  ;;  %v2447_v54 = vld [vmem:[#allocation7 + $0x1] sm:$0x1] }
 0x287   :  { %v1381_v53 = vmax.f32 %v1379_v51, 1e-12  ;;  %vm2449_vm15 = vcmp.eq.f32.partialorder %v2447_v54, 0.0 }
 0x288   :  { %5867 = vrcp.f32 %v1433_v50  ;;  %v1588_v11 = vand.u32 4294901760, %v6687_v0  ;;  %v2446_v50 = vld [vmem:[#allocation7] sm:$0x1]  ;;  %v2453_v51 = vshrl.u32 %v2452_v46, 7 }
 0x289   :  { %v5862_v55 = vpop.eup %5861  ;;  %5869 = vrcp.f32 %v1381_v53  ;;  %vm2448_vm14 = vcmp.eq.f32.partialorder %v2446_v50, 0.0 }
 0x28a   :  { %v1437_v57 = vmul.f32 %v5862_v55, %v6646_v49  ;;  %v1589_v48 = vsub.f32 %v6687_v0, %v1588_v11  ;;  %v2454_v53 = vsub.s32 0, %v2453_v51  ;;  %v6220_v55 = vmov 0  }
 0x28c   :  { %v1517_v34 = vsel %vm193_vm0, %v1437_v57, 0  ;;  %v1590_v25 = vand.u32 4294901760, %v1589_v48  ;;  %v2450_v57 = vsel %vm2448_vm14, 1, %v6220_v55 }
 0x28d   :  { %v5864_v59 = vpop.eup %5863  ;;  %v1523_v61 = vand.u32 4294901760, %v1517_v34 }
 0x28e   :  { %v5866_v62 = vpop.eup %5865  ;;  %v1435_v63 = vmul.f32 %v5864_v59, %v6648_v52  ;;  %v1449_v59 = vpop.permute.xlu1 %1448 }
 0x28f   :  { %v6689_v1 = vsub.f32 %v1517_v34, %v1523_v61  ;;  %v1439_v2 = vmul.f32 %v5866_v62, %v6657_v60  ;;  %v2455_v34 = vrot.slane %v2450_v57, %v2454_v53 }
 0x290   :  { %v1514_v3 = vsel %vm193_vm0, %v1435_v63, 0 }
 0x291   :  { %v1520_v6 = vand.u32 4294901760, %v1514_v3  ;;  %v1982_v7 = vsel %vm193_vm0, %v1439_v2, 0  ;;  %v1606_v8 = vand.u32 4294901760, %v6689_v1  ;;  %vm2460_vm2 = vcmp.eq.s32.totalorder %v2455_v34, 1 }
 0x292   :  { %v5868_v9 = vpop.eup %5867  ;;  %v1988_v10 = vand.u32 4294901760, %v1982_v7 }
 0x293   :  { %v5870_v31 = vpop.eup %5869  ;;  %v6696_v33 = vpack.c.bf16 %v1523_v61, %v1520_v6  ;;  %v1598_v38 = vsub.f32 %v1514_v3, %v1520_v6  ;;  %v1441_v39 = vmul.f32 %v5868_v9, %v6652_v56  ;;  %v1607_v44 = vsub.f32 %v6689_v1, %v1606_v8  ;;  %v1447_v3 = vpop.permute.xlu0 %1446 }
 0x294   :  { %v6699_v40 = vsub.f32 %v1982_v7, %v1988_v10  ;;  %v1385_v41 = vmul.f32 %v5870_v31, %v6639_v32  ;;  %v1458_v9 = vsel %vm193_vm0, %v1447_v3, 0.0  ;;  %v1461_v31 = vsel %vm193_vm0, %v1449_v59, 0.0 }
 0x295   :  { %5517 = vmatpush3.bf16.xpose.msra.mxu0 %v6696_v33  ;;  %v1985_v42 = vsel %vm193_vm0, %v1441_v39, 0  ;;  %v1599_v43 = vand.u32 4294901760, %v1598_v38  ;;  %v1608_v22 = vand.u32 4294901760, %v1607_v44  ;;  %v5522_v35 = vpack.c.bf16 %v6689_v1, %v1598_v38  ;;  %v1451_v1 = vpop.permute.xlu1 %1450 }
 0x296   :  { %v1991_v47 = vand.u32 4294901760, %v1985_v42  ;;  %5518 = vmatprep.subr.bf16.mxu0 %v6217_v4  ;;  %v1979_v12 = vsel %vm193_vm0, %v1385_v41, 0  ;;  %v2067_v13 = vand.u32 4294901760, %v6699_v40 }
 0x297   :  { %v1600_v20 = vsub.f32 %v1598_v38, %v1599_v43  ;;  %v6711_v32 = vand.u32 4294901760, %v1979_v12  ;;  %v5528_v37 = vpack.c.bf16 %v1606_v8, %v1599_v43  ;;  %v1464_v38 = vsel %vm193_vm0, %v1451_v1, 0.0 }
 0x298   :  { %v5534_v21 = vpack.c.bf16 %v1991_v47, %v1988_v10  ;;  %v2073_v17 = vsub.f32 %v1985_v42, %v1991_v47  ;;  %v2068_v23 = vsub.f32 %v6699_v40, %v2067_v13 }
 0x299   :  { %v1601_v19 = vand.u32 4294901760, %v1600_v20  ;;  %v2055_v24 = vsub.f32 %v1979_v12, %v6711_v32 }
 0x29a   :  { %5535 = vmatpush3.bf16.xpose.msra.mxu1 %v5534_v21  ;;  %v2074_v26 = vand.u32 4294901760, %v2073_v17  ;;  %v2069_v18 = vand.u32 4294901760, %v2068_v23  ;;  %v5540_v36 = vpack.c.bf16 %v2073_v17, %v6699_v40 }
 0x29b   :  { %v5519_v27 = vpack.c.bf16 %v1608_v22, %v1601_v19  ;;  %v2056_v28 = vand.u32 4294901760, %v2055_v24  ;;  %5536 = vmatprep.subr.bf16.mxu1 %v6217_v4 }
 0x29c   :  { %5076 = vmatmul.mubr.f32.vlgmr.msra.gmra.mrb[6].mxu0 %v1590_v25  ;;  %v2075_v14 = vsub.f32 %v2073_v17, %v2074_v26  ;;  %v5546_v45 = vpack.c.bf16 %v2074_v26, %v2067_v13 }
 0x29d   :  { %5520 = vmatpush3.bf16.xpose.msra.mxu0 %v5519_v27  ;;  %v2057_v15 = vsub.f32 %v2055_v24, %v2056_v28  ;;  %5082 = vmatprep.mubr.msk.f32.mxu0 %vm6218_vm1, %v6219_v5 }
 0x29e   :  { %v2076_v29 = vand.u32 4294901760, %v2075_v14  ;;  %5521 = vmatprep.subr.bf16.mxu0 %v6217_v4 }
 0x29f   :  { %v2058_v30 = vand.u32 4294901760, %v2057_v15 }
 0x2a0   :  { %v5537_v16 = vpack.c.bf16 %v2076_v29, %v2069_v18 }
 0x2a1   :  { %5118 = vmatmul.mubr.f32.vlgmr.msra.gmra.mrb[4].mxu1 %v2058_v30 }
 0x2a2   :  { %5538 = vmatpush3.bf16.xpose.msra.mxu1 %v5537_v16  ;;  %5124 = vmatprep.mubr.msk.f32.mxu1 %vm6218_vm1, %v6219_v5 }
 0x2a3   :  { %5539 = vmatprep.subr.bf16.mxu1 %v6217_v4 }
 0x2a4   :  { %5083 = vmatmul.mubr.f32.vlgmr.msra.gmra.mrb[6].mxu0 %v6682_v58 }
 0x2a5   :  { %5523 = vmatpush3.bf16.xpose.msra.mxu0 %v5522_v35  ;;  %5089 = vmatprep.mubr.msk.f32.mxu0 %vm6218_vm1, %v6219_v5 }
 0x2a6   :  { %5524 = vmatprep.subr.bf16.mxu0 %v6217_v4 }
 0x2a9   :  { %5125 = vmatmul.mubr.f32.vlgmr.msra.gmra.mrb[4].mxu1 %v6711_v32 }
 0x2aa   :  { %5541 = vmatpush3.bf16.xpose.msra.mxu1 %v5540_v36  ;;  %5131 = vmatprep.mubr.msk.f32.mxu1 %vm6218_vm1, %v6219_v5 }
 0x2ab   :  { %5542 = vmatprep.subr.bf16.mxu1 %v6217_v4 }
 0x2ac   :  { %5090 = vmatmul.mubr.f32.vlgmr.msra.gmra.mrb[6].mxu0 %v6687_v0 }
 0x2ad   :  { %5526 = vmatpush3.bf16.xpose.msra.mxu0 %v6696_v33  ;;  %5096 = vmatprep.mubr.msk.f32.mxu0 %vm6218_vm1, %v6219_v5 }
 0x2ae   :  { %5527 = vmatprep.subr.bf16.mxu0 %v6217_v4 }
 0x2b1   :  { %5132 = vmatmul.mubr.f32.vlgmr.msra.gmra.mrb[4].mxu1 %v2055_v24 }
 0x2b2   :  { %5544 = vmatpush3.bf16.xpose.msra.mxu1 %v5534_v21  ;;  %5138 = vmatprep.mubr.msk.f32.mxu1 %vm6218_vm1, %v6219_v5 }
 0x2b3   :  { %5545 = vmatprep.subr.bf16.mxu1 %v6217_v4 }
 0x2b4   :  { %5097 = vmatmul.mubr.f32.vlgmr.msra.gmra.mrb[6].mxu0 %v1588_v11  ;;  %v1453_v11 = vpop.permute.xlu1 %1452 }
 0x2b5   :  { %5529 = vmatpush3.bf16.xpose.msra.mxu0 %v5528_v37  ;;  %5103 = vmatprep.mubr.msk.f32.mxu0 %vm6218_vm1, %v6219_v5 }
 0x2b6   :  { %5530 = vmatprep.subr.bf16.mxu0 %v6217_v4 }
 0x2b9   :  { %5139 = vmatmul.mubr.f32.vlgmr.msra.gmra.mrb[4].mxu1 %v2056_v28 }
 0x2ba   :  { %5547 = vmatpush3.bf16.xpose.msra.mxu1 %v5546_v45  ;;  %5145 = vmatprep.mubr.msk.f32.mxu1 %vm6218_vm1, %v6219_v5 }
 0x2bb   :  { %5548 = vmatprep.subr.bf16.mxu1 %v6217_v4 }
 0x2bc   :  { %5104 = vmatmul.mubr.f32.vlgmr.msra.gmra.mrb[6].mxu0 %v6682_v58 }
 0x2bd   :  { %5532 = vmatpush3.bf16.xpose.msra.mxu0 %v6696_v33  ;;  %5110 = vmatprep.mubr.msk.f32.mxu0 %vm6218_vm1, %v6219_v5  ;;  %v1467_v33 = vsel %vm193_vm0, %v1453_v11, 0.0 }
 0x2be   :  { %5551 = vmatprep.subr.bf16.mxu0 %v6217_v4 }
 0x2c1   :  { %5146 = vmatmul.mubr.f32.vlgmr.msra.gmra.mrb[4].mxu1 %v6711_v32 }
 0x2c2   :  { %5550 = vmatpush3.bf16.xpose.msra.mxu1 %v5534_v21  ;;  %5152 = vmatprep.mubr.msk.f32.mxu1 %vm6218_vm1, %v6219_v5 }
 0x2c3   :  { %5569 = vmatprep.subr.bf16.mxu1 %v6217_v4 }
 0x2c4   :  { %5111 = vmatmul.mubr.f32.vlgmr.msra.gmra.mrb[6].mxu0 %v6682_v58  ;;  %v2451_v58 = vsel %vm2449_vm15, 1, %v6220_v55 }
 0x2c5   :  { %5159 = vmatprep.mubr.msk.f32.mxu0 %vm6218_vm1, %v6219_v5  ;;  %v2459_v61 = vrot.slane %v2451_v58, %v2454_v53 }
 0x2c7   :  { %vm2461_vm4 = vcmp.eq.s32.totalorder %v2459_v61, 1 }
 0x2c9   :  { %5153 = vmatmul.mubr.f32.vlgmr.msra.gmra.mrb[4].mxu1 %v6711_v32 }
 0x2ca   :  { %5201 = vmatprep.mubr.msk.f32.mxu1 %vm6218_vm1, %v6219_v5 }
 0x397   :  { %v1974_v62 = vpop.f32.mrb[6].mxu0 }
 0x398   :  { %v2462_v63 = vsel %vm2460_vm2, -1e+09, %v1974_v62  ;;  %v5112_v0 = vpop.f32.mrb[7].mxu0 }
 0x399   :  { %v2465_v2 = vsel %vm2464_vm3, %v2462_v63, -inf }
 0x39a   :  { %2466 = vmax.xlane.f32.xlu0 %v2465_v2 }
 0x39c   :  { %v2442_v6 = vpop.f32.mrb[4].mxu1 }
 0x39d   :  { %v6764_v7 = vsel %vm2461_vm4, -1e+09, %v2442_v6  ;;  %v5154_v8 = vpop.f32.mrb[5].mxu1 }
 0x39e   :  { %1459 = vadd.xlane.f32.xlu0 %v1458_v9  ;;  %v2468_v10 = vsel %vm2464_vm3, %v6764_v7, -inf }
 0x39f   :  { %2469 = vmax.xlane.f32.xlu1 %v2468_v10 }
 0x3a2   :  { %1462 = vadd.xlane.f32.xlu0 %v1461_v31 }
 0x3a3   :  { %1468 = vadd.xlane.f32.xlu1 %v1467_v33 }
 0x3a6   :  { %1465 = vadd.xlane.f32.xlu0 %v1464_v38 }
 0x427   :  { %v2467_v39 = vpop.xlane.xlu0 %2466 }
 0x428   :  { %v2471_v40 = vsub.f32 %v2462_v63, %v2467_v39 }
 0x42a   :  { %v2473_v41 = vmul.f32 1.442695, %v2471_v40 }
 0x42b   :  { %v1460_v42 = vpop.xlane.xlu0 %1459 }
 0x42c   :  { %5871 = vpow2.f32 %v2473_v41  ;;  %vm1472_vm5 = vcmp.eq.f32.partialorder %v1460_v42, inf  ;;  %v1475_v20 = vand.u32 2147483648, %v1460_v42  ;;  %vm1474_vm6 = vcmp.eq.f32.partialorder %v1460_v42, 0.0  ;;  %v2470_v46 = vpop.xlane.xlu1 %2469 }
 0x42d   :  { %5873 = vrsqrt.f32 %v1460_v42  ;;  %v2472_v51 = vsub.f32 %v6764_v7, %v2470_v46 }
 0x42f   :  { %v1463_v43 = vpop.xlane.xlu0 %1462  ;;  %v2475_v53 = vmul.f32 1.442695, %v2472_v51  ;;  %v3429_v51 = vld [vmem:[#allocation11] sm:$0xff] }
 0x430   :  { %5875 = vrsqrt.f32 %v1463_v43  ;;  %vm1479_vm7 = vcmp.eq.f32.partialorder %v1463_v43, inf  ;;  %v1482_v24 = vand.u32 2147483648, %v1463_v43  ;;  %vm1481_vm8 = vcmp.eq.f32.partialorder %v1463_v43, 0.0  ;;  %v1469_v50 = vpop.xlane.xlu1 %1468 }
 0x431   :  { %vm1493_vm11 = vcmp.eq.f32.partialorder %v1469_v50, inf  ;;  %v1496_v55 = vand.u32 2147483648, %v1469_v50  ;;  %vm1495_vm12 = vcmp.eq.f32.partialorder %v1469_v50, 0.0 }
 0x433   :  { %v1466_v44 = vpop.xlane.xlu0 %1465 }
 0x434   :  { %5877 = vrsqrt.f32 %v1466_v44  ;;  %vm1486_vm9 = vcmp.eq.f32.partialorder %v1466_v44, inf  ;;  %v1489_v14 = vand.u32 2147483648, %v1466_v44  ;;  %vm1488_vm10 = vcmp.eq.f32.partialorder %v1466_v44, 0.0 }
 0x436   :  { %v6772_v47 = vpop.eup %5871 }
 0x437   :  { %v5874_v48 = vpop.eup %5873  ;;  %v2477_v12 = vsel %vm2464_vm3, %v6772_v47, 0.0 }
 0x438   :  { %v1471_v13 = vmul.f32 %v5874_v48, %v1460_v42  ;;  %2478 = vadd.xlane.f32.xlu0 %v2477_v12 }
 0x43a   :  { %v5876_v32 = vpop.eup %5875  ;;  %v1473_v21 = vsel %vm1472_vm5, %v1460_v42, %v1471_v13 }
 0x43b   :  { %v1476_v17 = vsel %vm1474_vm6, %v1475_v20, %v1473_v21  ;;  %v1478_v19 = vmul.f32 %v5876_v32, %v1463_v43 }
 0x43c   :  { %v1498_v22 = vmax.f32 %v1476_v17, 1e-12 }
 0x43d   :  { %v1480_v25 = vsel %vm1479_vm7, %v1463_v43, %v1478_v19 }
 0x43e   :  { %v5878_v23 = vpop.eup %5877  ;;  %v1483_v26 = vsel %vm1481_vm8, %v1482_v24, %v1480_v25  ;;  %5879 = vrcp.f32 %v1498_v22 }
 0x43f   :  { %v1499_v27 = vmax.f32 %v1483_v26, 1e-12  ;;  %v1485_v28 = vmul.f32 %v5878_v23, %v1466_v44 }
 0x441   :  { %5881 = vrcp.f32 %v1499_v27  ;;  %v1487_v15 = vsel %vm1486_vm9, %v1466_v44, %v1485_v28 }
 0x442   :  { %v1490_v18 = vsel %vm1488_vm10, %v1489_v14, %v1487_v15 }
 0x443   :  { %v1500_v29 = vmax.f32 %v1490_v18, 1e-12 }
 0x445   :  { %5883 = vrcp.f32 %v1500_v29 }
 0x446   :  { %5885 = vrsqrt.f32 %v1469_v50 }
 0x447   :  { %5887 = vpow2.f32 %v2475_v53  ;;  %v3430_v53 = vld [vmem:[#allocation11 + $0x8] sm:$0xff] }
 0x448   :  { %v5880_v30 = vpop.eup %5879 }
 0x449   :  { %v1503_v35 = vmul.f32 %v5880_v30, %v6648_v52 }
 0x44b   :  { %v5882_v16 = vpop.eup %5881 }
 0x44c   :  { %v1505_v36 = vmul.f32 %v5882_v16, %v6646_v49 }
 0x44e   :  { %2491 = vrot.lane.b32.xlu0 %v1503_v35, %s6216_s10  ;;  %2493 = vrot.lane.b32.xlu1 %v1505_v36, %s6216_s10 }
 0x44f   :  { %v5884_v37 = vpop.eup %5883 }
 0x450   :  { %v1507_v45 = vmul.f32 %v5884_v37, %v6657_v60  ;;  %v5886_v54 = vpop.eup %5885 }
 0x451   :  { %v1492_v52 = vmul.f32 %v5886_v54, %v1469_v50  ;;  %v6783_v34 = vpop.eup %5887  ;;  %v3447_v54 = vand.u32 4294901760, %v3429_v51 }
 0x452   :  { %2961 = vrot.lane.b32.xlu1 %v1507_v45, %s6216_s10  ;;  %v2480_v60 = vsel %vm2464_vm3, %v6783_v34, 0.0 }
 0x453   :  { %v1494_v49 = vsel %vm1493_vm11, %v1469_v50, %v1492_v52  ;;  %v3450_v52 = vand.u32 4294901760, %v3430_v53 }
 0x454   :  { %v1497_v57 = vsel %vm1495_vm12, %v1496_v55, %v1494_v49  ;;  %v3431_v55 = vld [vmem:[#allocation11 + $0x10] sm:$0xff] }
 0x455   :  { %v1501_v59 = vmax.f32 %v1497_v57, 1e-12  ;;  %v6825_v49 = vpack.c.bf16 %v3450_v52, %v3447_v54  ;;  %v3432_v57 = vld [vmem:[#allocation11 + $0x18] sm:$0xff] }
 0x457   :  { %5889 = vrcp.f32 %v1501_v59  ;;  %v3544_v59 = vsub.f32 %v3430_v53, %v3450_v52 }
 0x461   :  { %v5890_v58 = vpop.eup %5889 }
 0x462   :  { %v1509_v61 = vmul.f32 %v5890_v58, %v6652_v56  ;;  %v3456_v58 = vand.u32 4294901760, %v3432_v57 }
 0x476   :  { %2481 = vadd.xlane.f32.xlu1 %v2480_v60  ;;  %v3453_v60 = vand.u32 4294901760, %v3431_v55 }
 0x487   :  { %2963 = vrot.lane.b32.xlu1 %v1509_v61, %s6216_s10  ;;  %v3545_v61 = vand.u32 4294901760, %v3544_v59 }
 0x4c0   :  { %v2494_v63 = vpop.permute.xlu1 %2493 }
 0x4c1   :  { %v2504_v1 = vand.u32 4294901760, %v2494_v63 }
 0x4c3   :  { %v2586_v7 = vsub.f32 %v2494_v63, %v2504_v1  ;;  %v3546_v63 = vsub.f32 %v3544_v59, %v3545_v61 }
 0x4c4   :  { %v2962_v13 = vpop.permute.xlu1 %2961 }
 0x4c5   :  { %v2479_v62 = vpop.xlane.xlu0 %2478  ;;  %v2587_v11 = vand.u32 4294901760, %v2586_v7  ;;  %v2971_v21 = vand.u32 4294901760, %v2962_v13 }
 0x4c6   :  { %5891 = vrcp.f32 %v2479_v62 }
 0x4c7   :  { %v2588_v39 = vsub.f32 %v2586_v7, %v2587_v11  ;;  %v3049_v24 = vsub.f32 %v2962_v13, %v2971_v21 }
 0x4c9   :  { %v2492_v0 = vpop.permute.xlu0 %2491  ;;  %v2589_v43 = vand.u32 4294901760, %v2588_v39  ;;  %v3050_v27 = vand.u32 4294901760, %v3049_v24 }
 0x4ca   :  { %v2501_v2 = vand.u32 4294901760, %v2492_v0 }
 0x4cb   :  { %v3051_v29 = vsub.f32 %v3049_v24, %v3050_v27 }
 0x4cc   :  { %v5552_v3 = vpack.c.bf16 %v2504_v1, %v2501_v2  ;;  %v2579_v6 = vsub.f32 %v2492_v0, %v2501_v2  ;;  %v3551_v0 = vsub.f32 %v3431_v55, %v3453_v60  ;;  %v3558_v1 = vsub.f32 %v3432_v57, %v3456_v58 }
 0x4cd   :  { %v3052_v36 = vand.u32 4294901760, %v3051_v29 }
 0x4ce   :  { %5553 = vmatpush3.bf16.msra.mxu0 %v5552_v3  ;;  %v2580_v10 = vand.u32 4294901760, %v2579_v6 }
 0x4cf   :  { %5554 = vmatprep.subr.bf16.mxu0 %v6217_v4 }
 0x4d0   :  { %v5892_v8 = vpop.eup %5891  ;;  %v2581_v33 = vsub.f32 %v2579_v6, %v2580_v10  ;;  %v5564_v12 = vpack.c.bf16 %v2587_v11, %v2580_v10 }
 0x4d1   :  { %v2484_v9 = vmul.f32 %v5892_v8, %v6772_v47  ;;  %v5558_v47 = vpack.c.bf16 %v2586_v7, %v2579_v6  ;;  %v3552_v6 = vand.u32 4294901760, %v3551_v0  ;;  %v3559_v7 = vand.u32 4294901760, %v3558_v1 }
 0x4d2   :  { %v2582_v41 = vand.u32 4294901760, %v2581_v33 }
 0x4d3   :  { %2487 = vst.msk [vmem:[#allocation21] sm:$0xff] %vm2464_vm3, %v2484_v9  ;;  %v2498_v56 = vsel %vm2464_vm3, %v2484_v9, 0  ;;  %v3553_v9 = vsub.f32 %v3551_v0, %v3552_v6  ;;  %v3560_v10 = vsub.f32 %v3558_v1, %v3559_v7 }
 0x4d4   :  { %v2567_v31 = vand.u32 4294901760, %v2498_v56  ;;  %v5555_v48 = vpack.c.bf16 %v2589_v43, %v2582_v41  ;;  %v3976_v41 = vld [vmem:[#allocation14] sm:$0xff]  ;;  %v3978_v43 = vld [vmem:[#allocation14 + $0x10] sm:$0xff] }
 0x4d5   :  { %v3554_v11 = vand.u32 4294901760, %v3553_v9 }
 0x4d6   :  { %v2568_v38 = vsub.f32 %v2498_v56, %v2567_v31  ;;  %v3561_v56 = vand.u32 4294901760, %v3560_v10 }
 0x4d8   :  { %v2569_v40 = vand.u32 4294901760, %v2568_v38 }
 0x4da   :  { %v2570_v42 = vsub.f32 %v2568_v38, %v2569_v40 }
 0x4dc   :  { %v2571_v44 = vand.u32 4294901760, %v2570_v42  ;;  %v3977_v42 = vld [vmem:[#allocation14 + $0x8] sm:$0xff] }
 0x4de   :  { %5160 = vmatmul.mubr.f32.vlgmr.msra.gmra.mrb[8].mxu0 %v2571_v44  ;;  %v3999_v44 = vand.u32 4294901760, %v3976_v41 }
 0x4df   :  { %5556 = vmatpush3.bf16.msra.mxu0 %v5555_v48  ;;  %5166 = vmatprep.mubr.msk.f32.mxu0 %vm6218_vm1, %v6219_v5  ;;  %v4002_v48 = vand.u32 4294901760, %v3977_v42 }
 0x4e0   :  { %5557 = vmatprep.subr.bf16.mxu0 %v6217_v4 }
 0x4e6   :  { %5167 = vmatmul.mubr.f32.vlgmr.msra.gmra.mrb[8].mxu0 %v2567_v31 }
 0x4e7   :  { %5559 = vmatpush3.bf16.msra.mxu0 %v5558_v47  ;;  %5173 = vmatprep.mubr.msk.f32.mxu0 %vm6218_vm1, %v6219_v5  ;;  %v3979_v47 = vld [vmem:[#allocation14 + $0x18] sm:$0xff] }
 0x4e8   :  { %5560 = vmatprep.subr.bf16.mxu0 %v6217_v4  ;;  %v4008_v13 = vand.u32 4294901760, %v3979_v47 }
 0x4ee   :  { %5174 = vmatmul.mubr.f32.vlgmr.msra.gmra.mrb[8].mxu0 %v2568_v38  ;;  %v5607_v38 = vpack.c.bf16 %v3558_v1, %v3551_v0 }
 0x4ef   :  { %5562 = vmatpush3.bf16.msra.mxu0 %v5552_v3  ;;  %5180 = vmatprep.mubr.msk.f32.mxu0 %vm6218_vm1, %v6219_v5 }
 0x4f0   :  { %5563 = vmatprep.subr.bf16.mxu0 %v6217_v4 }
 0x4f6   :  { %5181 = vmatmul.mubr.f32.vlgmr.msra.gmra.mrb[8].mxu0 %v2569_v40  ;;  %v6835_v40 = vpack.c.bf16 %v3559_v7, %v3552_v6  ;;  %v3983_v6 = vld [vmem:[#allocation14 + $0x38] sm:$0xff] }
 0x4f7   :  { %5565 = vmatpush3.bf16.msra.mxu0 %v5564_v12  ;;  %5187 = vmatprep.mubr.msk.f32.mxu0 %vm6218_vm1, %v6219_v5  ;;  %v4005_v12 = vand.u32 4294901760, %v3978_v43  ;;  %v4020_v9 = vand.u32 4294901760, %v3983_v6 }
 0x4f8   :  { %5566 = vmatprep.subr.bf16.mxu0 %v6217_v4 }
 0x4fe   :  { %5188 = vmatmul.mubr.f32.vlgmr.msra.gmra.mrb[8].mxu0 %v2567_v31 }
 0x4ff   :  { %5568 = vmatpush3.bf16.msra.mxu0 %v5552_v3  ;;  %5194 = vmatprep.mubr.msk.f32.mxu0 %vm6218_vm1, %v6219_v5  ;;  %v3547_v3 = vand.u32 4294901760, %v3546_v63  ;;  %v3981_v63 = vld [vmem:[#allocation14 + $0x28] sm:$0xff] }
 0x500   :  { %5588 = vmatprep.subr.bf16.mxu0 %v6825_v49  ;;  %v4014_v1 = vand.u32 4294901760, %v3981_v63 }
 0x503   :  { %v2482_v20 = vpop.xlane.xlu1 %2481 }
 0x504   :  { %5893 = vrcp.f32 %v2482_v20  ;;  %v6837_v20 = vpack.c.bf16 %v4002_v48, %v3999_v44 }
 0x506   :  { %5195 = vmatmul.mubr.f32.vlgmr.msra.gmra.mrb[8].mxu0 %v2567_v31  ;;  %v5599_v31 = vpack.c.bf16 %v3561_v56, %v3554_v11 }
 0x507   :  { %v2964_v32 = vpop.permute.xlu1 %2963  ;;  %5590 = vmatpush3.bf16.msra.mxu0 %v6825_v49 }
 0x508   :  { %v2974_v17 = vand.u32 4294901760, %v2964_v32 }
 0x50a   :  { %v5570_v19 = vpack.c.bf16 %v2974_v17, %v2971_v21  ;;  %v3056_v22 = vsub.f32 %v2964_v32, %v2974_v17  ;;  %v6839_v32 = vsub.f32 %v3976_v41, %v3999_v44  ;;  %v6841_v21 = vsub.f32 %v3977_v42, %v4002_v48 }
 0x50b   :  { %v6843_v17 = vsub.f32 %v3978_v43, %v4005_v12 }
 0x50c   :  { %5571 = vmatpush3.bf16.msra.mxu1 %v5570_v19  ;;  %v3057_v26 = vand.u32 4294901760, %v3056_v22  ;;  %v5576_v46 = vpack.c.bf16 %v3056_v22, %v3049_v24  ;;  %v4094_v24 = vand.u32 4294901760, %v6839_v32 }
 0x50d   :  { %5572 = vmatprep.subr.bf16.mxu1 %v6217_v4 }
 0x50e   :  { %v5894_v25 = vpop.eup %5893  ;;  %v3058_v15 = vsub.f32 %v3056_v22, %v3057_v26  ;;  %v5582_v50 = vpack.c.bf16 %v3057_v26, %v3050_v27  ;;  %v6847_v22 = vsub.f32 %v3979_v47, %v4008_v13  ;;  %v4095_v27 = vsub.f32 %v6839_v32, %v4094_v24 }
 0x50f   :  { %v2486_v23 = vmul.f32 %v5894_v25, %v6783_v34  ;;  %v3537_v34 = vsub.f32 %v3429_v51, %v3447_v54  ;;  %v4101_v25 = vand.u32 4294901760, %v6841_v21 }
 0x510   :  { %v3059_v16 = vand.u32 4294901760, %v3058_v15  ;;  %v4115_v26 = vand.u32 4294901760, %v6847_v22 }
 0x511   :  { %2488 = vst.msk [vmem:[#allocation21 + $0x8] sm:$0xff] %vm2464_vm3, %v2486_v23  ;;  %v2968_v28 = vsel %vm2464_vm3, %v2486_v23, 0  ;;  %v5603_v33 = vpack.c.bf16 %v3544_v59, %v3537_v34  ;;  %v4108_v23 = vand.u32 4294901760, %v6843_v17 }
 0x512   :  { %v3037_v14 = vand.u32 4294901760, %v2968_v28  ;;  %v5573_v45 = vpack.c.bf16 %v3059_v16, %v3052_v36  ;;  %v4116_v15 = vsub.f32 %v6847_v22, %v4115_v26 }
 0x514   :  { %v3038_v18 = vsub.f32 %v2968_v28, %v3037_v14  ;;  %v4102_v28 = vsub.f32 %v6841_v21, %v4101_v25  ;;  %v4117_v16 = vand.u32 4294901760, %v4116_v15 }
 0x516   :  { %v3039_v30 = vand.u32 4294901760, %v3038_v18  ;;  %v4103_v29 = vand.u32 4294901760, %v4102_v28 }
 0x518   :  { %v3040_v35 = vsub.f32 %v3038_v18, %v3039_v30 }
 0x51a   :  { %v3041_v37 = vand.u32 4294901760, %v3040_v35 }
 0x51c   :  { %5202 = vmatmul.mubr.f32.vlgmr.msra.gmra.mrb[6].mxu1 %v3041_v37 }
 0x51d   :  { %5574 = vmatpush3.bf16.msra.mxu1 %v5573_v45  ;;  %5208 = vmatprep.mubr.msk.f32.mxu1 %vm6218_vm1, %v6219_v5 }
 0x51e   :  { %5575 = vmatprep.subr.bf16.mxu1 %v6217_v4 }
 0x524   :  { %5209 = vmatmul.mubr.f32.vlgmr.msra.gmra.mrb[6].mxu1 %v3037_v14 }
 0x525   :  { %5577 = vmatpush3.bf16.msra.mxu1 %v5576_v46  ;;  %5215 = vmatprep.mubr.msk.f32.mxu1 %vm6218_vm1, %v6219_v5 }
 0x526   :  { %5578 = vmatprep.subr.bf16.mxu1 %v6217_v4 }
 0x52c   :  { %5216 = vmatmul.mubr.f32.vlgmr.msra.gmra.mrb[6].mxu1 %v3038_v18  ;;  %v4096_v18 = vand.u32 4294901760, %v4095_v27  ;;  %v5667_v27 = vpack.c.bf16 %v6841_v21, %v6839_v32 }
 0x52d   :  { %5580 = vmatpush3.bf16.msra.mxu1 %v5570_v19  ;;  %5222 = vmatprep.mubr.msk.f32.mxu1 %vm6218_vm1, %v6219_v5 }
 0x52e   :  { %5581 = vmatprep.subr.bf16.mxu1 %v6217_v4  ;;  %v5651_v35 = vpack.c.bf16 %v4103_v29, %v4096_v18  ;;  %v4665_v29 = vld [vmem:[#allocation13] ss:$0 sm:$0xff] }
 0x534   :  { %5223 = vmatmul.mubr.f32.vlgmr.msra.gmra.mrb[6].mxu1 %v3039_v30 }
 0x535   :  { %5583 = vmatpush3.bf16.msra.mxu1 %v5582_v50  ;;  %5229 = vmatprep.mubr.msk.f32.mxu1 %vm6218_vm1, %v6219_v5 }
 0x536   :  { %5584 = vmatprep.subr.bf16.mxu1 %v6217_v4  ;;  %v3538_v4 = vand.u32 4294901760, %v3537_v34 }
 0x538   :  { %v3539_v62 = vsub.f32 %v3537_v34, %v3538_v4  ;;  %v6833_v39 = vpack.c.bf16 %v3545_v61, %v3538_v4 }
 0x53a   :  { %v3540_v2 = vand.u32 4294901760, %v3539_v62  ;;  %v3980_v62 = vld [vmem:[#allocation14 + $0x20] sm:$0xff] }
 0x53b   :  { %v4011_v0 = vand.u32 4294901760, %v3980_v62 }
 0x53c   :  { %5230 = vmatmul.mubr.f32.vlgmr.msra.gmra.mrb[6].mxu1 %v3037_v14  ;;  %v5595_v8 = vpack.c.bf16 %v3547_v3, %v3540_v2  ;;  %v3982_v3 = vld [vmem:[#allocation14 + $0x30] sm:$0xff] }
 0x53d   :  { %5586 = vmatpush3.bf16.msra.mxu1 %v5570_v19  ;;  %5236 = vmatprep.mubr.msk.f32.mxu1 %vm6218_vm1, %v6219_v5  ;;  %v6829_v5 = vpack.c.bf16 %v3456_v58, %v3453_v60  ;;  %v6845_v19 = vpack.c.bf16 %v4008_v13, %v4005_v12  ;;  %v4121_v2 = vsub.f32 %v3980_v62, %v4011_v0  ;;  %vm3991_vm1 = vcmask 523264  }
 0x53e   :  { %5652 = vmatprep.subr.bf16.mxu1 %v5651_v35  ;;  %v6889_v47 = vpack.c.bf16 %v4014_v1, %v4011_v0  ;;  %v5703_v0 = vpack.c.bf16 %v4115_v26, %v4108_v23 }
 0x53f   :  { %5592 = vmatprep.subr.bf16.mxu0 %v6829_v5  ;;  %v4122_v7 = vand.u32 4294901760, %v4121_v2 }
 0x540   :  { %5594 = vmatpush3.bf16.msra.mxu0 %v6829_v5 }
 0x541   :  { %5596 = vmatprep.subr.bf16.mxu0 %v5595_v8  ;;  %v4123_v10 = vsub.f32 %v4121_v2, %v4122_v7 }
 0x544   :  { %5237 = vmatmul.mubr.f32.vlgmr.msra.gmra.mrb[6].mxu1 %v3037_v14  ;;  %v4109_v14 = vsub.f32 %v6843_v17, %v4108_v23 }
 0x545   :  { %5654 = vmatpush3.bf16.msra.mxu1 %v5651_v35 }
 0x546   :  { %v4110_v30 = vand.u32 4294901760, %v4109_v14 }
 0x548   :  { %v5655_v36 = vpack.c.bf16 %v4117_v16, %v4110_v30 }
 0x54a   :  { %5656 = vmatprep.subr.bf16.mxu1 %v5655_v36 }
 0x54b   :  { %5658 = vmatpush3.bf16.msra.mxu1 %v5655_v36 }
 0x5d9   :  { %v6865_v37 = vpop.f32.mrb[8].mxu0 }
 0x5da   :  { %v3441_v45 = vsel %vm193_vm0, %v6865_v37, 0  ;;  %v5196_v46 = vpop.f32.mrb[9].mxu0 }
 0x5db   :  { %v3515_v50 = vand.u32 4294901760, %v3441_v45 }
 0x5dd   :  { %v3516_v51 = vsub.f32 %v3441_v45, %v3515_v50 }
 0x5df   :  { %v3517_v53 = vand.u32 4294901760, %v3516_v51 }
 0x5e1   :  { %v3518_v54 = vsub.f32 %v3516_v51, %v3517_v53 }
 0x5e3   :  { %v3519_v52 = vand.u32 4294901760, %v3518_v54 }
 0x5e5   :  { %5247 = vmatprep.mubr.f32.mxu0 %v3519_v52 }
 0x617   :  { %v6869_v55 = vpop.f32.mrb[6].mxu1 }
 0x618   :  { %v3444_v57 = vsel %vm193_vm0, %v6869_v55, 0  ;;  %v5238_v34 = vpop.f32.mrb[7].mxu1 }
 0x619   :  { %v3525_v59 = vand.u32 4294901760, %v3444_v57 }
 0x61b   :  { %v3526_v60 = vsub.f32 %v3444_v57, %v3525_v59  ;;  %v5671_v57 = vpack.c.bf16 %v6847_v22, %v6843_v17  ;;  %v4666_v17 = vld [vmem:[#allocation16] ss:$0 sm:$0xff] }
 0x61d   :  { %v3527_v58 = vand.u32 4294901760, %v3526_v60 }
 0x61f   :  { %v3528_v4 = vsub.f32 %v3526_v60, %v3527_v58 }
 0x621   :  { %v3529_v61 = vand.u32 4294901760, %v3528_v4 }
 0x623   :  { %5248 = vmatmul.mubr.f32.vlgmr.msra.gmra.mrb[10].mxu0 %v3529_v61 }
 0x624   :  { %5598 = vmatpush3.bf16.msra.mxu0 %v5595_v8  ;;  %5258 = vmatprep.mubr.f32.mxu0 %v3515_v50 }
 0x625   :  { %5600 = vmatprep.subr.bf16.mxu0 %v5599_v31 }
 0x628   :  { %5602 = vmatpush3.bf16.msra.mxu0 %v5599_v31  ;;  %v4142_v31 = vsub.f32 %v3983_v6, %v4020_v9 }
 0x629   :  { %5604 = vmatprep.subr.bf16.mxu0 %v5603_v33 }
 0x62b   :  { %5259 = vmatmul.mubr.f32.vlgmr.msra.gmra.mrb[10].mxu0 %v3525_v59 }
 0x62c   :  { %5606 = vmatpush3.bf16.msra.mxu0 %v5603_v33  ;;  %5269 = vmatprep.mubr.f32.mxu0 %v3516_v51  ;;  %v4124_v33 = vand.u32 4294901760, %v4123_v10 }
 0x62d   :  { %5608 = vmatprep.subr.bf16.mxu0 %v5607_v38 }
 0x630   :  { %5610 = vmatpush3.bf16.msra.mxu0 %v5607_v38 }
 0x631   :  { %5612 = vmatprep.subr.bf16.mxu0 %v6825_v49 }
 0x633   :  { %5270 = vmatmul.mubr.f32.vlgmr.msra.gmra.mrb[10].mxu0 %v3526_v60 }
 0x634   :  { %5614 = vmatpush3.bf16.msra.mxu0 %v6825_v49  ;;  %5280 = vmatprep.mubr.f32.mxu0 %v3517_v53 }
 0x635   :  { %5616 = vmatprep.subr.bf16.mxu0 %v6829_v5 }
 0x638   :  { %5618 = vmatpush3.bf16.msra.mxu0 %v6829_v5 }
 0x639   :  { %5620 = vmatprep.subr.bf16.mxu0 %v6833_v39 }
 0x63b   :  { %5281 = vmatmul.mubr.f32.vlgmr.msra.gmra.mrb[10].mxu0 %v3527_v58 }
 0x63c   :  { %5622 = vmatpush3.bf16.msra.mxu0 %v6833_v39  ;;  %5291 = vmatprep.mubr.f32.mxu0 %v3515_v50 }
 0x63d   :  { %5624 = vmatprep.subr.bf16.mxu0 %v6835_v40 }
 0x640   :  { %5626 = vmatpush3.bf16.msra.mxu0 %v6835_v40  ;;  %v4143_v40 = vand.u32 4294901760, %v4142_v31 }
 0x641   :  { %5628 = vmatprep.subr.bf16.mxu0 %v6825_v49 }
 0x642   :  { %v4144_v43 = vsub.f32 %v4142_v31, %v4143_v40 }
 0x643   :  { %5292 = vmatmul.mubr.f32.vlgmr.msra.gmra.mrb[10].mxu0 %v3525_v59 }
 0x644   :  { %5630 = vmatpush3.bf16.msra.mxu0 %v6825_v49  ;;  %5302 = vmatprep.mubr.f32.mxu0 %v3515_v50  ;;  %v4128_v49 = vsub.f32 %v3981_v63, %v4014_v1  ;;  %v4145_v48 = vand.u32 4294901760, %v4144_v43  ;;  %v5699_v63 = vpack.c.bf16 %v4101_v25, %v4094_v24 }
 0x645   :  { %5632 = vmatprep.subr.bf16.mxu0 %v6829_v5 }
 0x646   :  { %v4129_v8 = vand.u32 4294901760, %v4128_v49  ;;  %v5675_v28 = vpack.c.bf16 %v4128_v49, %v4121_v2 }
 0x648   :  { %5634 = vmatpush3.bf16.msra.mxu0 %v6829_v5  ;;  %v4017_v5 = vand.u32 4294901760, %v3982_v3  ;;  %v4130_v11 = vsub.f32 %v4128_v49, %v4129_v8  ;;  %v5707_v15 = vpack.c.bf16 %v4129_v8, %v4122_v7 }
 0x649   :  { %5636 = vmatprep.subr.bf16.mxu0 %v6837_v20 }
 0x64a   :  { %v4135_v56 = vsub.f32 %v3982_v3, %v4017_v5  ;;  %v4131_v38 = vand.u32 4294901760, %v4130_v11  ;;  %v6891_v12 = vpack.c.bf16 %v4020_v9, %v4017_v5 }
 0x64b   :  { %5303 = vmatmul.mubr.f32.vlgmr.msra.gmra.mrb[10].mxu0 %v3525_v59 }
 0x64c   :  { %5638 = vmatpush3.bf16.msra.mxu0 %v6837_v20  ;;  %v4136_v39 = vand.u32 4294901760, %v4135_v56  ;;  %v5659_v41 = vpack.c.bf16 %v4131_v38, %v4124_v33  ;;  %v5679_v14 = vpack.c.bf16 %v4142_v31, %v4135_v56 }
 0x64d   :  { %5640 = vmatprep.subr.bf16.mxu0 %v6845_v19 }
 0x64e   :  { %v4137_v42 = vsub.f32 %v4135_v56, %v4136_v39  ;;  %5660 = vmatprep.subr.bf16.mxu1 %v5659_v41  ;;  %v5711_v18 = vpack.c.bf16 %v4143_v40, %v4136_v39 }
 0x64f   :  { %5662 = vmatpush3.bf16.msra.mxu1 %v5659_v41 }
 0x650   :  { %5642 = vmatpush3.bf16.msra.mxu0 %v6845_v19  ;;  %v4138_v44 = vand.u32 4294901760, %v4137_v42 }
 0x651   :  { %5644 = vmatprep.subr.bf16.mxu0 %v6889_v47 }
 0x652   :  { %v5663_v13 = vpack.c.bf16 %v4145_v48, %v4138_v44 }
 0x654   :  { %5664 = vmatprep.subr.bf16.mxu1 %v5663_v13  ;;  %5646 = vmatpush3.bf16.msra.mxu0 %v6889_v47 }
 0x655   :  { %5666 = vmatpush3.bf16.msra.mxu1 %v5663_v13  ;;  %5648 = vmatprep.subr.bf16.mxu0 %v6891_v12 }
 0x656   :  { %5668 = vmatprep.subr.bf16.mxu1 %v5667_v27 }
 0x658   :  { %5650 = vmatpush3.bf16.msra.mxu0 %v6891_v12 }
 0x71e   :  { %v5304_v30 = vpop.f32.mrb[10].mxu0 }
 0x71f   :  { %v5735_v16 = vadd.f32 %v5304_v30, %v4665_v29  ;;  %v3964_v35 = vpop.f32.mrb[11].mxu0 }
 0x720   :  { %v5736_v36 = vadd.f32 %v4665_v29, %v3964_v35 }
 0x721   :  { %v3975_v45 = vmax.f32 %v5735_v16, 0.0 }
 0x722   :  { %v3974_v46 = vmax.f32 %v5736_v36, 0.0 }
 0x723   :  { %v3996_v50 = vsel %vm3991_vm1, %v3975_v45, 0 }
 0x724   :  { %v4081_v51 = vand.u32 4294901760, %v3996_v50  ;;  %v3993_v53 = vsel %vm3991_vm1, %v3974_v46, 0 }
 0x725   :  { %v4071_v54 = vand.u32 4294901760, %v3993_v53 }
 0x726   :  { %v4082_v52 = vsub.f32 %v3996_v50, %v4081_v51 }
 0x727   :  { %5340 = vmatprep.mubr.f32.mxu1 %v4071_v54  ;;  %v4072_v34 = vsub.f32 %v3993_v53, %v4071_v54 }
 0x728   :  { %v4083_v59 = vand.u32 4294901760, %v4082_v52  ;;  %5341 = vmatmul.mubr.f32.vlgmr.msra.gmra.mrb[8].mxu1 %v4081_v51 }
 0x729   :  { %5670 = vmatpush3.bf16.msra.mxu1 %v5667_v27  ;;  %5359 = vmatprep.mubr.f32.mxu1 %v4072_v34  ;;  %v4073_v60 = vand.u32 4294901760, %v4072_v34 }
 0x72a   :  { %5672 = vmatprep.subr.bf16.mxu1 %v5671_v57  ;;  %v4084_v58 = vsub.f32 %v4082_v52, %v4083_v59 }
 0x72b   :  { %v4074_v4 = vsub.f32 %v4072_v34, %v4073_v60 }
 0x72c   :  { %v4085_v62 = vand.u32 4294901760, %v4084_v58 }
 0x72d   :  { %5674 = vmatpush3.bf16.msra.mxu1 %v5671_v57  ;;  %v4075_v61 = vand.u32 4294901760, %v4074_v4 }
 0x72e   :  { %5676 = vmatprep.subr.bf16.mxu1 %v5675_v28 }
 0x72f   :  { %5321 = vmatprep.mubr.f32.mxu0 %v4075_v61 }
 0x730   :  { %5322 = vmatmul.mubr.f32.vlgmr.msra.gmra.mrb[12].mxu0 %v4085_v62 }
 0x731   :  { %5678 = vmatpush3.bf16.msra.mxu1 %v5675_v28 }
 0x732   :  { %5680 = vmatprep.subr.bf16.mxu1 %v5679_v14 }
 0x735   :  { %5682 = vmatpush3.bf16.msra.mxu1 %v5679_v14 }
 0x736   :  { %5684 = vmatprep.subr.bf16.mxu1 %v6837_v20 }
 0x738   :  { %5360 = vmatmul.mubr.f32.vlgmr.msra.gmra.mrb[8].mxu1 %v4082_v52 }
 0x739   :  { %5686 = vmatpush3.bf16.msra.mxu1 %v6837_v20  ;;  %5378 = vmatprep.mubr.f32.mxu1 %v4073_v60 }
 0x73a   :  { %5688 = vmatprep.subr.bf16.mxu1 %v6845_v19 }
 0x73d   :  { %5690 = vmatpush3.bf16.msra.mxu1 %v6845_v19 }
 0x73e   :  { %5692 = vmatprep.subr.bf16.mxu1 %v6889_v47 }
 0x741   :  { %5694 = vmatpush3.bf16.msra.mxu1 %v6889_v47 }
 0x742   :  { %5696 = vmatprep.subr.bf16.mxu1 %v6891_v12 }
 0x745   :  { %5698 = vmatpush3.bf16.msra.mxu1 %v6891_v12 }
 0x746   :  { %5700 = vmatprep.subr.bf16.mxu1 %v5699_v63 }
 0x748   :  { %5379 = vmatmul.mubr.f32.vlgmr.msra.gmra.mrb[8].mxu1 %v4083_v59 }
 0x749   :  { %5702 = vmatpush3.bf16.msra.mxu1 %v5699_v63  ;;  %5397 = vmatprep.mubr.f32.mxu1 %v4071_v54 }
 0x74a   :  { %5704 = vmatprep.subr.bf16.mxu1 %v5703_v0 }
 0x74d   :  { %5706 = vmatpush3.bf16.msra.mxu1 %v5703_v0 }
 0x74e   :  { %5708 = vmatprep.subr.bf16.mxu1 %v5707_v15 }
 0x751   :  { %5710 = vmatpush3.bf16.msra.mxu1 %v5707_v15 }
 0x752   :  { %5712 = vmatprep.subr.bf16.mxu1 %v5711_v18 }
 0x755   :  { %5714 = vmatpush3.bf16.msra.mxu1 %v5711_v18 }
 0x756   :  { %5716 = vmatprep.subr.bf16.mxu1 %v6837_v20 }
 0x758   :  { %5398 = vmatmul.mubr.f32.vlgmr.msra.gmra.mrb[8].mxu1 %v4081_v51 }
 0x759   :  { %5718 = vmatpush3.bf16.msra.mxu1 %v6837_v20  ;;  %5416 = vmatprep.mubr.f32.mxu1 %v4071_v54 }
 0x75a   :  { %5720 = vmatprep.subr.bf16.mxu1 %v6845_v19 }
 0x75d   :  { %5722 = vmatpush3.bf16.msra.mxu1 %v6845_v19 }
 0x75e   :  { %5724 = vmatprep.subr.bf16.mxu1 %v6889_v47 }
 0x761   :  { %5726 = vmatpush3.bf16.msra.mxu1 %v6889_v47 }
 0x762   :  { %5728 = vmatprep.subr.bf16.mxu1 %v6891_v12 }
 0x765   :  { %5730 = vmatpush3.bf16.msra.mxu1 %v6891_v12 }
 0x768   :  { %5417 = vmatmul.mubr.f32.vlgmr.msra.gmra.mrb[8].mxu1 %v4081_v51 }
 0x803   :  { %v5323_v32 = vpop.f32.mrb[12].mxu0 }
 0x804   :  { %v4077_v21 = vpop.f32.mrb[13].mxu0  ;;  %v4088_v22 = vadd.f32 %v5323_v32, %v4666_v17 }
 0x805   :  { %v4078_v24 = vadd.f32 %v4666_v17, %v4077_v21 }
 0x83b   :  { %v5418_v20 = vpop.f32.mrb[8].mxu1 }
 0x83c   :  { %v5738_v25 = vadd.f32 %v5418_v20, %v4088_v22  ;;  %v4568_v23 = vpop.f32.mrb[9].mxu1 }
 0x83d   :  { %v5740_v26 = vadd.f32 %v4568_v23, %v4078_v24 }
 0x83e   :  { %v4579_v19 = vadd.f32 %v5738_v25, %v6869_v55 }
 0x83f   :  { %v4578_v1 = vadd.f32 %v5740_v26, %v6865_v37 }
 0x840   :  { %v4583_v2 = vsel %vm193_vm0, %v4579_v19, 0.0 }
 0x841   :  { %4584 = vadd.xlane.f32.xlu1 %v4583_v2  ;;  %v4580_v49 = vsel %vm193_vm0, %v4578_v1, 0.0 }
 0x842   :  { %4581 = vadd.xlane.f32.xlu0 %v4580_v49 }
 0x8ce   :  { %v4585_v3 = vpop.xlane.xlu1 %4584 }
 0x8cf   :  { %v4588_v6 = vmul.f32 0.03125, %v4585_v3  ;;  %v4582_v7 = vpop.xlane.xlu0 %4581 }
 0x8d0   :  { %v4587_v8 = vmul.f32 0.03125, %v4582_v7 }
 0x8d1   :  { %v4590_v5 = vsub.f32 %v4579_v19, %v4588_v6 }
 0x8d2   :  { %v4589_v9 = vsub.f32 %v4578_v1, %v4587_v8 }
 0x8d3   :  { %v4592_v56 = vmul.f32 %v4590_v5, %v4590_v5 }
 0x8d4   :  { %v4591_v10 = vmul.f32 %v4589_v9, %v4589_v9 }
 0x8d5   :  { %v4596_v55 = vsel %vm193_vm0, %v4592_v56, 0.0 }
 0x8d6   :  { %v4593_v11 = vsel %vm193_vm0, %v4591_v10, 0.0 }
 0x8d7   :  { %4594 = vadd.xlane.f32.xlu0 %v4593_v11 }
 0x8db   :  { %4597 = vadd.xlane.f32.xlu0 %v4596_v55 }
 0x8dc   :  { %6152 = shalt.err (!%p6149_p8)
}
 0x8dd   :  { %s6153_s20 = scalar_lea.hbm %s6975_s12, 256 }
 0x8de   :  { %p6154_p9 = scmp.ne.s32.totalorder %s6975_s12, %s6153_s20  ;;  %p6157_p10 = scmp.lt.u32.totalorder %s6153_s20, %s6975_s12 }
 0x8e0   :  { %p6159_p11 = pnand %p6157_p10, %p6154_p9 }
 0x8e2   :  { %6162 = shalt.err (!%p6159_p11)
}
 0x8e3   :  { %4650 = dma.vmem_to_hbm [thread:$0]  %s4645_s30, 256, %s6975_s12, [#allocation22], %s6203_s15, %s6203_s15, %s6204_s16   ;;  %v4667_v42 = vld [vmem:[#allocation17] ss:$0 sm:$0xff]  ;;  %v4668_v44 = vld [vmem:[#allocation19] ss:$0 sm:$0xff] }
 0x8e4   :  { %s6222_s19 = smov [#allocation20]  }
 0x8e5   :  { %s4632_s28 = sshll.u32 %s6222_s19, 4  ;;  %s4633_s28 = int_to_ptr.vmem [resolvable:$true] %s4632_s28 }
 0x8e6   :  { %s6163_s12 = scalar_lea.vmem %s4633_s28, 256  ;;  %p6168_p13 = scmp.lt.s32.totalorder %s4633_s28, %s4633_s28 }
 0x8e7   :  { %p6164_p12 = scmp.ne.s32.totalorder %s4633_s28, %s6163_s12  ;;  %p6169_p0 = scmp.lt.s32.totalorder %s6163_s12, %s6163_s12 }
 0x8e9   :  { %p6170_p1 = por %p6169_p0, %p6168_p13 }
 0x8eb   :  { %p6171_p2 = pnand %p6170_p1, %p6164_p12 }
 0x964   :  { %v4595_v37 = vpop.xlane.xlu0 %4594 }
 0x965   :  { %v4599_v31 = vmul.f32 0.03125, %v4595_v37 }
 0x967   :  { %v4601_v33 = vadd.f32 1e-05, %v4599_v31 }
 0x968   :  { %v4598_v38 = vpop.xlane.xlu0 %4597 }
 0x969   :  { %5895 = vrsqrt.f32 %v4601_v33  ;;  %v4600_v39 = vmul.f32 0.03125, %v4598_v38 }
 0x96b   :  { %v4602_v40 = vadd.f32 1e-05, %v4600_v39 }
 0x96d   :  { %5897 = vrsqrt.f32 %v4602_v40 }
 0x973   :  { %v5896_v41 = vpop.eup %5895 }
 0x974   :  { %v4605_v43 = vmul.f32 %v5896_v41, %v4589_v9 }
 0x976   :  { %v4614_v48 = vmul.f32 %v4667_v42, %v4605_v43 }
 0x977   :  { %v5898_v47 = vpop.eup %5897 }
 0x978   :  { %v4606_v12 = vmul.f32 %v5898_v47, %v4590_v5  ;;  %v4623_v13 = vadd.f32 %v4668_v44, %v4614_v48 }
 0x97a   :  { %v4615_v27 = vmul.f32 %v4667_v42, %v4606_v12  ;;  %4625 = vst.msk [vmem:[#allocation20] sm:$0xff] %vm193_vm0, %v4623_v13 }
 0x97c   :  { %v4624_v28 = vadd.f32 %v4668_v44, %v4615_v27 }
 0x97e   :  { %4626 = vst.msk [vmem:[#allocation20 + $0x8] sm:$0xff] %vm193_vm0, %v4624_v28 }
 0x97f   :  { %6174 = shalt.err (!%p6171_p2)
}
 0x980   :  { %s6175_s14 = scalar_lea.hbm %s6974_s11, 256 }
 0x981   :  { %p6176_p3 = scmp.ne.s32.totalorder %s6974_s11, %s6175_s14  ;;  %p6179_p4 = scmp.lt.u32.totalorder %s6175_s14, %s6974_s11 }
 0x983   :  { %p6181_p5 = pnand %p6179_p4, %p6176_p3 }
 0x985   :  { %6184 = shalt.err (!%p6181_p5)
}
 0x986   :  { %4638 = dma.vmem_to_hbm [thread:$0]  %s4633_s28, 256, %s6974_s11, [#allocation4], %s6203_s15, %s6203_s15, %s6204_s16  }
 0x987   :  { %6197 = dma.done.wait [#allocation4], 256  }
 0x988   :  { %6198 = vsyncadd [#allocation4], 4294967040 }
 0x989   :  { %6199 = dma.done.wait [#allocation22], 256  }
 0x98a   :  { %6200 = vsyncadd [#allocation22], 4294967040 }
 0x98b   :  { %4657 = vsyncpa [#allocation3], 1 }
 0x98c   :  { %4658 = vsyncpa [#allocation6], 1 }
 0x98d   :  { %4659 = vsyncpa [#allocation9], 1 }
 0x98e   :  { %4660 = vsyncpa [#allocation12], 1 }
 0x98f   :  { %4661 = vsyncpa [#allocation15], 1 }
 0x990   :  { %4662 = vsyncpa [#allocation18], 1 }
 0x991   :  { %4663 = vsyncpa [#allocation4], 1 }
 0x992   :  { %4664 = vsyncpa [#allocation22], 1 }

</bundles_post_ra>
